<compile_context>
chip_gen: v7x
topology: tpu7x:2x2x1
jax: 0.10.0
libtpu: 0.0.40
codegen_flags: <defaults>
</compile_context>

<pallas_src>
import functools

import jax
import jax.numpy as jnp
from jax.experimental import pallas as pl
from jax.experimental.pallas import tpu as pltpu


# ---------------------------------------------------------------------------
# Kernel
# ---------------------------------------------------------------------------
def _map_fusion_kernel(bev_ref, osm_ref, wpool_ref, bpool_ref,
                       w1_ref, b1_ref, w2_ref, b2_ref, wup_ref, bup_ref,
                       out_ref, *, H2):
    R = bev_ref.shape[0]          # bs * H2 rows (batch folded into M)
    L = w1_ref.shape[1]           # W2 * C2 lanes of a conv-stage activation row

    # --- bev_down (2x2 avg pool) + input_proj (1x1 conv): one matmul ---------
    proj = jnp.dot(bev_ref[...], wpool_ref[...],
                   preferred_element_type=jnp.float32) + bpool_ref[...]

    # --- channel concat [proj | osm] == 128-lane-aligned lane concat ---------
    cat = jnp.concatenate([proj, osm_ref[...]], axis=-1)          # (R, L)

    # --- masks for the H-direction conv taps (batch folded into rows) --------
    row = jax.lax.broadcasted_iota(jnp.int32, (R, L), 0)
    not_top = (row % H2) != 0
    not_bot = (row % H2) != (H2 - 1)
    zrow = jnp.zeros((1, L), jnp.float32)

    def conv3x3(x, w_ref, b_ref):
        # 3-wide im2col over H only (slices along the leading row axis); the
        # W-direction taps + per-pixel channel matmul are folded into w_ref.
        up = jnp.where(not_top, jnp.concatenate([zrow, x[:-1, :]], axis=0), 0.0)
        dn = jnp.where(not_bot, jnp.concatenate([x[1:, :], zrow], axis=0), 0.0)
        taps = jnp.concatenate([up, x, dn], axis=-1)              # (R, 3*L)
        return jnp.dot(taps, w_ref[...],
                       preferred_element_type=jnp.float32) + b_ref[...]

    # --- BasicResBlock: conv3x3 -> ReLU -> conv3x3 -> +identity -> ReLU ------
    y1 = jnp.maximum(conv3x3(cat, w1_ref, b1_ref), 0.0)
    fused = jnp.maximum(conv3x3(y1, w2_ref, b2_ref) + cat, 0.0)

    # --- fusion_up: 1x1 conv + nearest 2x upsample folded into one matmul ----
    out_ref[...] = jnp.dot(fused, wup_ref[...],
                           preferred_element_type=jnp.float32) + bup_ref[...]


# ---------------------------------------------------------------------------
# Wrapper: weight folding + lane-dense reshapes + pallas_call
# ---------------------------------------------------------------------------
def _fold_params(params, *, bev_w):
    """Fold pool / banded-conv / upsample structure into lane-dense matrices."""
    C_in, E = params["w_proj"].shape
    C2 = 2 * E
    E_out = params["w_up"].shape[1]
    W = bev_w
    W2 = W // 2
    f32 = jnp.float32

    # bev_down (2x2 avg pool) + input_proj -> (2*W*C_in, W2*E)
    sel_pool = (jnp.arange(W)[:, None] // 2
                == jnp.arange(W2)[None, :]).astype(f32)                 # (W, W2)
    wp = jnp.einsum("wj,ce->wcje", sel_pool,
                    params["w_proj"].astype(f32) / 4.0).reshape(W * C_in, W2 * E)
    wpool = jnp.concatenate([wp, wp], axis=0)                           # (2*W*C_in, W2*E)
    bpool = jnp.tile(params["b_proj"].astype(f32).reshape(1, E), (1, W2))

    # 3x3 convs: W-direction taps folded into a banded (3*W2*C2, W2*C2) matrix
    dj = jnp.arange(3)
    band = ((jnp.arange(W2)[:, None, None] - jnp.arange(W2)[None, None, :])
            == (dj[None, :, None] - 1)).astype(f32)                     # (j_in, dj, j_out)

    def fold_conv(w9, b):
        wr = w9.astype(f32).reshape(3, 3, 2, E, 2, E)   # (dh, dj, g_in, e_in, g_out, e_out)
        wf = jnp.einsum("idj,tdgehf->tgiehjf", band, wr).reshape(3 * W2 * C2, W2 * C2)
        br = jnp.tile(b.astype(f32).reshape(1, 2, 1, E),
                      (1, 1, W2, 1)).reshape(1, W2 * C2)
        return wf, br

    w1f, b1r = fold_conv(params["w1"], params["b1"])
    w2f, b2r = fold_conv(params["w2"], params["b2"])

    # fusion_up: 1x1 conv + nearest 2x upsample -> (W2*C2, 2*W*E_out)
    sel_up = (jnp.arange(W)[None, :] // 2
              == jnp.arange(W2)[:, None]).astype(f32)                   # (W2, W)
    wupr = params["w_up"].astype(f32).reshape(2, E, E_out)
    wup = jnp.einsum("jF,gef,a->gjeaFf", sel_up, wupr,
                     jnp.ones((2,), f32)).reshape(W2 * C2, 2 * W * E_out)
    bup = jnp.tile(params["b_up"].astype(f32).reshape(1, E_out), (1, 2 * W))
    return wpool, bpool, w1f, b1r, w2f, b2r, wup, bup


def map_fusion_forward(bev_feat, osm_feat, params, *, bev_h, bev_w):
    """bev_feat: (bs, bev_h*bev_w, C_in) fp32; osm_feat: (bs, E, H/2, W/2) NCHW fp32."""
    bs, _, C_in = bev_feat.shape
    H2, W2 = bev_h // 2, bev_w // 2
    E = params["w_proj"].shape[1]
    E_out = params["w_up"].shape[1]
    R = bs * H2

    wpool, bpool, w1f, b1r, w2f, b2r, wup, bup = _fold_params(params, bev_w=bev_w)

    # Lane-dense, copy-free input layouts.
    bev_rows = bev_feat.astype(jnp.float32).reshape(R, 2 * bev_w * C_in)   # (bs*H2, 2*W*C_in)
    osm_rows = jnp.transpose(osm_feat.astype(jnp.float32),
                             (0, 2, 3, 1)).reshape(R, W2 * E)              # (bs*H2, W2*E)

    args = (bev_rows, osm_rows, wpool, bpool, w1f, b1r, w2f, b2r, wup, bup)
    out_rows = pl.pallas_call(
        functools.partial(_map_fusion_kernel, H2=H2),
        out_shape=jax.ShapeDtypeStruct((R, 2 * bev_w * E_out), jnp.float32),
        grid=(1,),
        in_specs=[pl.BlockSpec(a.shape, lambda i: (0, 0)) for a in args],
        out_specs=pl.BlockSpec((R, 2 * bev_w * E_out), lambda i: (0, 0)),
        compiler_params=pltpu.CompilerParams(dimension_semantics=("arbitrary",)),
    )(*args)

    # (bs*H2, 2, W, E_out) -> (bs, H*W, E_out): pure row-major reshape (free).
    return out_rows.reshape(bs, bev_h * bev_w, E_out)


# ---------------------------------------------------------------------------
# Plain-JAX reference with identical math (for validation)
# ---------------------------------------------------------------------------
def map_fusion_reference(bev_feat, osm_feat, params, *, bev_h, bev_w):
    bs, _, C_in = bev_feat.shape
    H2, W2 = bev_h // 2, bev_w // 2
    bev = bev_feat.reshape(bs, bev_h, bev_w, C_in)
    small = bev.reshape(bs, H2, 2, W2, 2, C_in).mean(axis=(2, 4))
    proj = jnp.einsum("bhwc,ce->bhwe", small, params["w_proj"]) + params["b_proj"][0]
    osm = jnp.transpose(osm_feat, (0, 2, 3, 1))
    cat = jnp.concatenate([proj, osm], axis=-1)

    def conv3x3(x, w, b):
        xp = jnp.pad(x, ((0, 0), (1, 1), (1, 1), (0, 0)))
        acc = jnp.zeros_like(x)
        for di in range(3):
            for dj in range(3):
                acc = acc + jnp.einsum(
                    "bhwc,cd->bhwd",
                    xp[:, di:di + H2, dj:dj + W2, :], w[di * 3 + dj])
        return acc + b[0]

    y1 = jax.nn.relu(conv3x3(cat, params["w1"], params["b1"]))
    y2 = conv3x3(y1, params["w2"], params["b2"])
    fused = jax.nn.relu(y2 + cat)
    out_small = jnp.einsum("bhwc,ce->bhwe", fused, params["w_up"]) + params["b_up"][0]
    up = jnp.repeat(jnp.repeat(out_small, 2, axis=1), 2, axis=2)
    return up.reshape(bs, bev_h * bev_w, -1)


if __name__ == "__main__":
    bs = 2
    bev_h = bev_w = 16
    C_in = 8          # input_dim (channels of bev_feat / input_proj)
    E = 16            # embed_dims
    E_out = 16        # fusion_up output channels
    H2, W2 = bev_h // 2, bev_w // 2

    key = jax.random.PRNGKey(0)
    keys = jax.random.split(key, 10)
    s = 0.1
    params = {
        "w_proj": jax.random.normal(keys[0], (C_in, E), jnp.float32) * s,
        "b_proj": jax.random.normal(keys[1], (1, E), jnp.float32) * s,
        "w1": jax.random.normal(keys[2], (9, 2 * E, 2 * E), jnp.float32) * s,
        "b1": jax.random.normal(keys[3], (1, 2 * E), jnp.float32) * s,
        "w2": jax.random.normal(keys[4], (9, 2 * E, 2 * E), jnp.float32) * s,
        "b2": jax.random.normal(keys[5], (1, 2 * E), jnp.float32) * s,
        "w_up": jax.random.normal(keys[6], (2 * E, E_out), jnp.float32) * s,
        "b_up": jax.random.normal(keys[7], (1, E_out), jnp.float32) * s,
    }
    bev_feat = jax.random.normal(keys[8], (bs, bev_h * bev_w, C_in), jnp.float32)
    osm_feat = jax.random.normal(keys[9], (bs, E, H2, W2), jnp.float32)  # NCHW like PyTorch

    out = map_fusion_forward(bev_feat, osm_feat, params, bev_h=bev_h, bev_w=bev_w)
    out = jax.block_until_ready(out)

    ref = map_fusion_reference(bev_feat, osm_feat, params, bev_h=bev_h, bev_w=bev_w)
    assert out.shape == (bs, bev_h * bev_w, E_out), out.shape
    assert bool(jnp.all(jnp.isfinite(out)))
    assert bool(jnp.allclose(out, ref, atol=2e-3, rtol=2e-3)), \
        float(jnp.max(jnp.abs(out - ref)))
    print("KERNEL_OK")
</pallas_src>

<mosaic_0001>
module attributes {stable_mosaic.version = 11 : i64} {
  func.func @_map_fusion_kernel(%arg0: i32, %arg1: memref<16x256xf32, #tpu.memory_space<vmem>>, %arg2: memref<16x128xf32, #tpu.memory_space<vmem>>, %arg3: memref<256x128xf32, #tpu.memory_space<vmem>>, %arg4: memref<1x128xf32, #tpu.memory_space<vmem>>, %arg5: memref<768x256xf32, #tpu.memory_space<vmem>>, %arg6: memref<1x256xf32, #tpu.memory_space<vmem>>, %arg7: memref<768x256xf32, #tpu.memory_space<vmem>>, %arg8: memref<1x256xf32, #tpu.memory_space<vmem>>, %arg9: memref<256x512xf32, #tpu.memory_space<vmem>>, %arg10: memref<1x512xf32, #tpu.memory_space<vmem>>, %arg11: memref<16x512xf32, #tpu.memory_space<vmem>>) attributes {dimension_semantics = [#tpu.dimension_semantics<arbitrary>], iteration_bounds = array<i64: 1>, scalar_prefetch = 0 : i64, scratch_operands = 0 : i64, tpu.core_type = #tpu.core_type<tc>, window_params = [{pipeline_mode = #tpu.pipeline_mode<synchronous>, transform_indices = @transform_0, window_bounds = array<i64: 16, 256>}, {pipeline_mode = #tpu.pipeline_mode<synchronous>, transform_indices = @transform_1, window_bounds = array<i64: 16, 128>}, {pipeline_mode = #tpu.pipeline_mode<synchronous>, transform_indices = @transform_2, window_bounds = array<i64: 256, 128>}, {pipeline_mode = #tpu.pipeline_mode<synchronous>, transform_indices = @transform_3, window_bounds = array<i64: 1, 128>}, {pipeline_mode = #tpu.pipeline_mode<synchronous>, transform_indices = @transform_4, window_bounds = array<i64: 768, 256>}, {pipeline_mode = #tpu.pipeline_mode<synchronous>, transform_indices = @transform_5, window_bounds = array<i64: 1, 256>}, {pipeline_mode = #tpu.pipeline_mode<synchronous>, transform_indices = @transform_6, window_bounds = array<i64: 768, 256>}, {pipeline_mode = #tpu.pipeline_mode<synchronous>, transform_indices = @transform_7, window_bounds = array<i64: 1, 256>}, {pipeline_mode = #tpu.pipeline_mode<synchronous>, transform_indices = @transform_8, window_bounds = array<i64: 256, 512>}, {pipeline_mode = #tpu.pipeline_mode<synchronous>, transform_indices = @transform_9, window_bounds = array<i64: 1, 512>}, {pipeline_mode = #tpu.pipeline_mode<synchronous>, transform_indices = @transform_10, window_bounds = array<i64: 16, 512>}]} {
    %c0 = arith.constant 0 : index
    %c0_0 = arith.constant 0 : index
    %0 = vector.load %arg1[%c0, %c0_0] : memref<16x256xf32, #tpu.memory_space<vmem>>, vector<16x256xf32>
    %c0_1 = arith.constant 0 : index
    %c0_2 = arith.constant 0 : index
    %1 = vector.load %arg3[%c0_1, %c0_2] : memref<256x128xf32, #tpu.memory_space<vmem>>, vector<256x128xf32>
    %cst = arith.constant dense<0.000000e+00> : vector<16x128xf32>
    %2 = tpu.matmul %0, %1, %cst {dimension_numbers = #tpu.dot_dimension_numbers<[1], [0], [0], [1], [0, 0, 1, 1], [], []>} : vector<16x256xf32>, vector<256x128xf32>, vector<16x128xf32> -> vector<16x128xf32>
    %c0_3 = arith.constant 0 : index
    %c0_4 = arith.constant 0 : index
    %3 = vector.load %arg4[%c0_3, %c0_4] : memref<1x128xf32, #tpu.memory_space<vmem>>, vector<1x128xf32>
    %4 = vector.broadcast %3 : vector<1x128xf32> to vector<16x128xf32>
    %5 = arith.addf %2, %4 : vector<16x128xf32>
    %c0_5 = arith.constant 0 : index
    %c0_6 = arith.constant 0 : index
    %6 = vector.load %arg2[%c0_5, %c0_6] : memref<16x128xf32, #tpu.memory_space<vmem>>, vector<16x128xf32>
    %7 = tpu.concatenate %5, %6 in 1 : vector<16x128xf32>, vector<16x128xf32> -> vector<16x256xf32>
    %8 = tpu.iota {dimensions = array<i32: 0>} : vector<16x256xi32>
    %c8_i32 = arith.constant 8 : i32
    %c0_i32 = arith.constant 0 : i32
    %9 = arith.cmpi eq, %c8_i32, %c0_i32 : i32
    %c1_i32 = arith.constant 1 : i32
    %10 = arith.select %9, %c1_i32, %c8_i32 : i32
    %11 = vector.broadcast %10 : i32 to vector<16x256xi32>
    %12 = arith.remsi %8, %11 : vector<16x256xi32>
    %c0_i32_7 = arith.constant 0 : i32
    %13 = vector.broadcast %c0_i32_7 : i32 to vector<16x256xi32>
    %14 = arith.cmpi ne, %12, %13 : vector<16x256xi32>
    %c0_i32_8 = arith.constant 0 : i32
    %15 = vector.broadcast %c0_i32_8 : i32 to vector<16x256xi32>
    %16 = arith.cmpi slt, %12, %15 : vector<16x256xi32>
    %c0_i32_9 = arith.constant 0 : i32
    %17 = arith.cmpi slt, %10, %c0_i32_9 : i32
    %18 = vector.broadcast %17 : i1 to vector<16x256xi1>
    %19 = vector.broadcast %18 : vector<16x256xi1> to vector<16x256xi1>
    %20 = arith.xori %16, %19 : vector<16x256xi1>
    %21 = arith.andi %20, %14 : vector<16x256xi1>
    %22 = vector.broadcast %10 : i32 to vector<16x256xi32>
    %23 = arith.addi %12, %22 : vector<16x256xi32>
    %24 = arith.select %21, %23, %12 : vector<16x256xi1>, vector<16x256xi32>
    %c0_i32_10 = arith.constant 0 : i32
    %25 = vector.broadcast %c0_i32_10 : i32 to vector<16x256xi32>
    %26 = arith.cmpi ne, %24, %25 : vector<16x256xi32>
    %c8_i32_11 = arith.constant 8 : i32
    %c0_i32_12 = arith.constant 0 : i32
    %27 = arith.cmpi eq, %c8_i32_11, %c0_i32_12 : i32
    %c1_i32_13 = arith.constant 1 : i32
    %28 = arith.select %27, %c1_i32_13, %c8_i32_11 : i32
    %29 = vector.broadcast %28 : i32 to vector<16x256xi32>
    %30 = arith.remsi %8, %29 : vector<16x256xi32>
    %c0_i32_14 = arith.constant 0 : i32
    %31 = vector.broadcast %c0_i32_14 : i32 to vector<16x256xi32>
    %32 = arith.cmpi ne, %30, %31 : vector<16x256xi32>
    %c0_i32_15 = arith.constant 0 : i32
    %33 = vector.broadcast %c0_i32_15 : i32 to vector<16x256xi32>
    %34 = arith.cmpi slt, %30, %33 : vector<16x256xi32>
    %c0_i32_16 = arith.constant 0 : i32
    %35 = arith.cmpi slt, %28, %c0_i32_16 : i32
    %36 = vector.broadcast %35 : i1 to vector<16x256xi1>
    %37 = vector.broadcast %36 : vector<16x256xi1> to vector<16x256xi1>
    %38 = arith.xori %34, %37 : vector<16x256xi1>
    %39 = arith.andi %38, %32 : vector<16x256xi1>
    %40 = vector.broadcast %28 : i32 to vector<16x256xi32>
    %41 = arith.addi %30, %40 : vector<16x256xi32>
    %42 = arith.select %39, %41, %30 : vector<16x256xi1>, vector<16x256xi32>
    %c7_i32 = arith.constant 7 : i32
    %43 = vector.broadcast %c7_i32 : i32 to vector<16x256xi32>
    %44 = arith.cmpi ne, %42, %43 : vector<16x256xi32>
    %cst_17 = arith.constant 0.000000e+00 : f32
    %45 = vector.broadcast %cst_17 : f32 to vector<1x256xf32>
    %46 = vector.extract_strided_slice %7 {offsets = [0, 0], sizes = [15, 256], strides = [1, 1]} : vector<16x256xf32> to vector<15x256xf32>
    %47 = tpu.concatenate %45, %46 in 0 : vector<1x256xf32>, vector<15x256xf32> -> vector<16x256xf32>
    %cst_18 = arith.constant 0.000000e+00 : f32
    %48 = vector.broadcast %cst_18 : f32 to vector<16x256xf32>
    %49 = arith.select %26, %47, %48 : vector<16x256xi1>, vector<16x256xf32>
    %50 = vector.extract_strided_slice %7 {offsets = [1, 0], sizes = [15, 256], strides = [1, 1]} : vector<16x256xf32> to vector<15x256xf32>
    %51 = tpu.concatenate %50, %45 in 0 : vector<15x256xf32>, vector<1x256xf32> -> vector<16x256xf32>
    %cst_19 = arith.constant 0.000000e+00 : f32
    %52 = vector.broadcast %cst_19 : f32 to vector<16x256xf32>
    %53 = arith.select %44, %51, %52 : vector<16x256xi1>, vector<16x256xf32>
    %54 = tpu.concatenate %49, %7, %53 in 1 : vector<16x256xf32>, vector<16x256xf32>, vector<16x256xf32> -> vector<16x768xf32>
    %c0_20 = arith.constant 0 : index
    %c0_21 = arith.constant 0 : index
    %55 = vector.load %arg5[%c0_20, %c0_21] : memref<768x256xf32, #tpu.memory_space<vmem>>, vector<768x256xf32>
    %cst_22 = arith.constant dense<0.000000e+00> : vector<16x256xf32>
    %56 = tpu.matmul %54, %55, %cst_22 {dimension_numbers = #tpu.dot_dimension_numbers<[1], [0], [0], [1], [0, 0, 1, 1], [], []>} : vector<16x768xf32>, vector<768x256xf32>, vector<16x256xf32> -> vector<16x256xf32>
    %c0_23 = arith.constant 0 : index
    %c0_24 = arith.constant 0 : index
    %57 = vector.load %arg6[%c0_23, %c0_24] : memref<1x256xf32, #tpu.memory_space<vmem>>, vector<1x256xf32>
    %58 = vector.broadcast %57 : vector<1x256xf32> to vector<16x256xf32>
    %59 = arith.addf %56, %58 : vector<16x256xf32>
    %cst_25 = arith.constant 0.000000e+00 : f32
    %60 = vector.broadcast %cst_25 : f32 to vector<16x256xf32>
    %61 = arith.maximumf %59, %60 : vector<16x256xf32>
    %62 = vector.extract_strided_slice %61 {offsets = [0, 0], sizes = [15, 256], strides = [1, 1]} : vector<16x256xf32> to vector<15x256xf32>
    %63 = tpu.concatenate %45, %62 in 0 : vector<1x256xf32>, vector<15x256xf32> -> vector<16x256xf32>
    %cst_26 = arith.constant 0.000000e+00 : f32
    %64 = vector.broadcast %cst_26 : f32 to vector<16x256xf32>
    %65 = arith.select %26, %63, %64 : vector<16x256xi1>, vector<16x256xf32>
    %66 = vector.extract_strided_slice %61 {offsets = [1, 0], sizes = [15, 256], strides = [1, 1]} : vector<16x256xf32> to vector<15x256xf32>
    %67 = tpu.concatenate %66, %45 in 0 : vector<15x256xf32>, vector<1x256xf32> -> vector<16x256xf32>
    %cst_27 = arith.constant 0.000000e+00 : f32
    %68 = vector.broadcast %cst_27 : f32 to vector<16x256xf32>
    %69 = arith.select %44, %67, %68 : vector<16x256xi1>, vector<16x256xf32>
    %70 = tpu.concatenate %65, %61, %69 in 1 : vector<16x256xf32>, vector<16x256xf32>, vector<16x256xf32> -> vector<16x768xf32>
    %c0_28 = arith.constant 0 : index
    %c0_29 = arith.constant 0 : index
    %71 = vector.load %arg7[%c0_28, %c0_29] : memref<768x256xf32, #tpu.memory_space<vmem>>, vector<768x256xf32>
    %cst_30 = arith.constant dense<0.000000e+00> : vector<16x256xf32>
    %72 = tpu.matmul %70, %71, %cst_30 {dimension_numbers = #tpu.dot_dimension_numbers<[1], [0], [0], [1], [0, 0, 1, 1], [], []>} : vector<16x768xf32>, vector<768x256xf32>, vector<16x256xf32> -> vector<16x256xf32>
    %c0_31 = arith.constant 0 : index
    %c0_32 = arith.constant 0 : index
    %73 = vector.load %arg8[%c0_31, %c0_32] : memref<1x256xf32, #tpu.memory_space<vmem>>, vector<1x256xf32>
    %74 = vector.broadcast %73 : vector<1x256xf32> to vector<16x256xf32>
    %75 = arith.addf %72, %74 : vector<16x256xf32>
    %76 = arith.addf %75, %7 : vector<16x256xf32>
    %cst_33 = arith.constant 0.000000e+00 : f32
    %77 = vector.broadcast %cst_33 : f32 to vector<16x256xf32>
    %78 = arith.maximumf %76, %77 : vector<16x256xf32>
    %c0_34 = arith.constant 0 : index
    %c0_35 = arith.constant 0 : index
    %79 = vector.load %arg9[%c0_34, %c0_35] : memref<256x512xf32, #tpu.memory_space<vmem>>, vector<256x512xf32>
    %cst_36 = arith.constant dense<0.000000e+00> : vector<16x512xf32>
    %80 = tpu.matmul %78, %79, %cst_36 {dimension_numbers = #tpu.dot_dimension_numbers<[1], [0], [0], [1], [0, 0, 1, 1], [], []>} : vector<16x256xf32>, vector<256x512xf32>, vector<16x512xf32> -> vector<16x512xf32>
    %c0_37 = arith.constant 0 : index
    %c0_38 = arith.constant 0 : index
    %81 = vector.load %arg10[%c0_37, %c0_38] : memref<1x512xf32, #tpu.memory_space<vmem>>, vector<1x512xf32>
    %82 = vector.broadcast %81 : vector<1x512xf32> to vector<16x512xf32>
    %83 = arith.addf %80, %82 : vector<16x512xf32>
    %c0_39 = arith.constant 0 : index
    %c0_40 = arith.constant 0 : index
    %84 = vector.load %arg11[%c0_39, %c0_40] : memref<16x512xf32, #tpu.memory_space<vmem>>, vector<16x512xf32>
    tpu.vector_store %arg11[%c0_39, %c0_40], %83 {strides = array<i32>} : memref<16x512xf32, #tpu.memory_space<vmem>>, vector<16x512xf32>,
    return
  }
  func.func @transform_0(%arg0: i32) -> (i32, i32) {
    %c0_i32 = arith.constant 0 : i32
    %c0_i32_0 = arith.constant 0 : i32
    %c0_i32_1 = arith.constant 0 : i32
    return %c0_i32, %c0_i32_0 : i32, i32
  }
  func.func @transform_1(%arg0: i32) -> (i32, i32) {
    %c0_i32 = arith.constant 0 : i32
    %c0_i32_0 = arith.constant 0 : i32
    %c0_i32_1 = arith.constant 0 : i32
    return %c0_i32, %c0_i32_0 : i32, i32
  }
  func.func @transform_2(%arg0: i32) -> (i32, i32) {
    %c0_i32 = arith.constant 0 : i32
    %c0_i32_0 = arith.constant 0 : i32
    %c0_i32_1 = arith.constant 0 : i32
    return %c0_i32, %c0_i32_0 : i32, i32
  }
  func.func @transform_3(%arg0: i32) -> (i32, i32) {
    %c0_i32 = arith.constant 0 : i32
    %c0_i32_0 = arith.constant 0 : i32
    %c0_i32_1 = arith.constant 0 : i32
    return %c0_i32, %c0_i32_0 : i32, i32
  }
  func.func @transform_4(%arg0: i32) -> (i32, i32) {
    %c0_i32 = arith.constant 0 : i32
    %c0_i32_0 = arith.constant 0 : i32
    %c0_i32_1 = arith.constant 0 : i32
    return %c0_i32, %c0_i32_0 : i32, i32
  }
  func.func @transform_5(%arg0: i32) -> (i32, i32) {
    %c0_i32 = arith.constant 0 : i32
    %c0_i32_0 = arith.constant 0 : i32
    %c0_i32_1 = arith.constant 0 : i32
    return %c0_i32, %c0_i32_0 : i32, i32
  }
  func.func @transform_6(%arg0: i32) -> (i32, i32) {
    %c0_i32 = arith.constant 0 : i32
    %c0_i32_0 = arith.constant 0 : i32
    %c0_i32_1 = arith.constant 0 : i32
    return %c0_i32, %c0_i32_0 : i32, i32
  }
  func.func @transform_7(%arg0: i32) -> (i32, i32) {
    %c0_i32 = arith.constant 0 : i32
    %c0_i32_0 = arith.constant 0 : i32
    %c0_i32_1 = arith.constant 0 : i32
    return %c0_i32, %c0_i32_0 : i32, i32
  }
  func.func @transform_8(%arg0: i32) -> (i32, i32) {
    %c0_i32 = arith.constant 0 : i32
    %c0_i32_0 = arith.constant 0 : i32
    %c0_i32_1 = arith.constant 0 : i32
    return %c0_i32, %c0_i32_0 : i32, i32
  }
  func.func @transform_9(%arg0: i32) -> (i32, i32) {
    %c0_i32 = arith.constant 0 : i32
    %c0_i32_0 = arith.constant 0 : i32
    %c0_i32_1 = arith.constant 0 : i32
    return %c0_i32, %c0_i32_0 : i32, i32
  }
  func.func @transform_10(%arg0: i32) -> (i32, i32) {
    %c0_i32 = arith.constant 0 : i32
    %c0_i32_0 = arith.constant 0 : i32
    %c0_i32_1 = arith.constant 0 : i32
    return %c0_i32, %c0_i32_0 : i32, i32
  }
}

</mosaic_0001>

<bundles_post_ra>
// kernel: tpu_custom_call.1
= control target key start
LH: loop header
LB: loop body
LE: loop exit
PB: predicated region body
PF: predicated region fallthrough
CT: control target
= control target key end

     0   :  { %15 = vsyncpa [#allocation3], 0  ;;  %s2687_s0 = inlined_call_operand.hbm [shape: f32[16,256], index: 0, kind: input, shape index: {}]   ;;  %s2688_s1 = inlined_call_operand.hbm [shape: f32[16,128], index: 1, kind: input, shape index: {}]   ;;  %s2689_s2 = inlined_call_operand.hbm [shape: f32[256,128], index: 2, kind: input, shape index: {}]   ;;  %s2690_s3 = inlined_call_operand.vmem [shape: f32[1,128], index: 3, kind: input, shape index: {}]   ;;  %s2691_s4 = inlined_call_operand.hbm [shape: f32[768,256], index: 4, kind: input, shape index: {}]   ;;  %s2692_s5 = inlined_call_operand.vmem [shape: f32[1,256], index: 5, kind: input, shape index: {}]   ;;  %s2693_s6 = inlined_call_operand.hbm [shape: f32[768,256], index: 6, kind: input, shape index: {}]   ;;  %s2694_s7 = inlined_call_operand.vmem [shape: f32[1,256], index: 7, kind: input, shape index: {}]   ;;  %s2695_s8 = inlined_call_operand.hbm [shape: f32[256,512], index: 8, kind: input, shape index: {}]   ;;  %s2696_s9 = inlined_call_operand.vmem [shape: f32[1,512], index: 9, kind: input, shape index: {}]   ;;  %s2697_s10 = inlined_call_operand.hbm [shape: f32[16,512], index: 10, kind: output, shape index: {}]  }
   0x1   :  { %16 = vsyncpa [#allocation6], 0 }
   0x2   :  { %17 = vsyncpa [#allocation9], 0 }
   0x3   :  { %18 = vsyncpa [#allocation12], 0 }
   0x4   :  { %19 = vsyncpa [#allocation4], 0  ;;  %s2359_s13 = smov [#allocation5]   ;;  %s2195_s17 = scalar_lea.hbm %s2688_s1, 256 }
   0x5   :  { %s37_s14 = sshll.u32 %s2359_s13, 4  ;;  %p2196_p0 = scmp.ne.s32.totalorder %s2688_s1, %s2195_s17  ;;  %s38_s14 = int_to_ptr.vmem [resolvable:$true] %s37_s14 }
   0x6   :  { %p2199_p1 = scmp.lt.u32.totalorder %s2195_s17, %s2688_s1 }
   0x8   :  { %p2201_p2 = pnand %p2199_p1, %p2196_p0 }
   0xa   :  { %2204 = shalt.err (!%p2201_p2)
}
   0xb   :  { %s2205_s22 = scalar_lea.vmem %s38_s14, 256  ;;  %p2210_p4 = scmp.lt.s32.totalorder %s38_s14, %s38_s14 }
   0xc   :  { %p2206_p3 = scmp.ne.s32.totalorder %s38_s14, %s2205_s22  ;;  %p2211_p5 = scmp.lt.s32.totalorder %s2205_s22, %s2205_s22 }
   0xe   :  { %p2212_p6 = por %p2211_p5, %p2210_p4 }
  0x10   :  { %p2213_p7 = pnand %p2212_p6, %p2206_p3 }
  0x12   :  { %2216 = shalt.err (!%p2213_p7)
}
  0x13   :  { %s2360_s23 = smov 128   ;;  %s2361_s24 = smov 8  }
  0x14   :  { %43 = dma.hbm_to_vmem [thread:$0]  %s2688_s1, 256, %s38_s14, [#allocation6], %s2360_s23, %s2360_s23, %s2361_s24  }
  0x15   :  { %s2362_s27 = smov [#allocation8]   ;;  %s2363_s29 = smov [#allocation2]  }
  0x16   :  { %s63_s28 = sshll.u32 %s2362_s27, 4  ;;  %s25_s30 = sshll.u32 %s2363_s29, 4  ;;  %s64_s28 = int_to_ptr.vmem [resolvable:$true] %s63_s28  ;;  %s26_s30 = int_to_ptr.vmem [resolvable:$true] %s25_s30 }
  0x17   :  { %s2217_s13 = scalar_lea.hbm %s2691_s4, 24576 }
  0x18   :  { %p2218_p8 = scmp.ne.s32.totalorder %s2691_s4, %s2217_s13  ;;  %p2221_p9 = scmp.lt.u32.totalorder %s2217_s13, %s2691_s4 }
  0x1a   :  { %p2223_p10 = pnand %p2221_p9, %p2218_p8 }
  0x1c   :  { %2226 = shalt.err (!%p2223_p10)
}
  0x1d   :  { %s2227_s1 = scalar_lea.vmem %s64_s28, 24576  ;;  %p2232_p12 = scmp.lt.s32.totalorder %s64_s28, %s64_s28 }
  0x1e   :  { %p2228_p11 = scmp.ne.s32.totalorder %s64_s28, %s2227_s1  ;;  %p2233_p13 = scmp.lt.s32.totalorder %s2227_s1, %s2227_s1 }
  0x20   :  { %p2234_p0 = por %p2233_p13, %p2232_p12 }
  0x22   :  { %p2235_p1 = pnand %p2234_p0, %p2228_p11 }
  0x24   :  { %2238 = shalt.err (!%p2235_p1)
}
  0x25   :  { %s2364_s14 = smov 256   ;;  %s2365_s19 = smov 16  }
  0x26   :  { %69 = dma.hbm_to_vmem [thread:$0]  %s2691_s4, 24576, %s64_s28, [#allocation9], %s2364_s14, %s2364_s14, %s2365_s19  }
  0x27   :  { %s2239_s26 = scalar_lea.hbm %s2687_s0, 512 }
  0x28   :  { %p2240_p2 = scmp.ne.s32.totalorder %s2687_s0, %s2239_s26  ;;  %p2243_p3 = scmp.lt.u32.totalorder %s2239_s26, %s2687_s0 }
  0x2a   :  { %p2245_p4 = pnand %p2243_p3, %p2240_p2 }
  0x2c   :  { %2248 = shalt.err (!%p2245_p4)
}
  0x2d   :  { %s2249_s13 = scalar_lea.vmem %s26_s30, 512  ;;  %p2254_p6 = scmp.lt.s32.totalorder %s26_s30, %s26_s30 }
  0x2e   :  { %p2250_p5 = scmp.ne.s32.totalorder %s26_s30, %s2249_s13  ;;  %p2255_p7 = scmp.lt.s32.totalorder %s2249_s13, %s2249_s13 }
  0x30   :  { %p2256_p8 = por %p2255_p7, %p2254_p6 }
  0x32   :  { %p2257_p9 = pnand %p2256_p8, %p2250_p5 }
  0x34   :  { %2260 = shalt.err (!%p2257_p9)
}
  0x35   :  { %31 = dma.hbm_to_vmem [thread:$0]  %s2687_s0, 512, %s26_s30, [#allocation3], %s2364_s14, %s2364_s14, %s2365_s19  }
  0x36   :  { %s2366_s15 = smov [#allocation7]   ;;  %s2367_s17 = smov [#allocation10]  }
  0x37   :  { %s49_s16 = sshll.u32 %s2366_s15, 4  ;;  %s77_s18 = sshll.u32 %s2367_s17, 4  ;;  %s50_s16 = int_to_ptr.vmem [resolvable:$true] %s49_s16  ;;  %s78_s18 = int_to_ptr.vmem [resolvable:$true] %s77_s18 }
  0x38   :  { %s2261_s21 = scalar_lea.hbm %s2689_s2, 4096 }
  0x39   :  { %p2262_p10 = scmp.ne.s32.totalorder %s2689_s2, %s2261_s21  ;;  %p2265_p11 = scmp.lt.u32.totalorder %s2261_s21, %s2689_s2 }
  0x3b   :  { %p2267_p12 = pnand %p2265_p11, %p2262_p10 }
  0x3d   :  { %2270 = shalt.err (!%p2267_p12)
}
  0x3e   :  { %s2271_s0 = scalar_lea.vmem %s50_s16, 4096  ;;  %p2276_p0 = scmp.lt.s32.totalorder %s50_s16, %s50_s16 }
  0x3f   :  { %p2272_p13 = scmp.ne.s32.totalorder %s50_s16, %s2271_s0  ;;  %p2277_p1 = scmp.lt.s32.totalorder %s2271_s0, %s2271_s0 }
  0x41   :  { %p2278_p2 = por %p2277_p1, %p2276_p0 }
  0x43   :  { %p2279_p3 = pnand %p2278_p2, %p2272_p13 }
  0x45   :  { %2282 = shalt.err (!%p2279_p3)
}
  0x46   :  { %55 = dma.hbm_to_vmem [thread:$0]  %s2689_s2, 4096, %s50_s16, [#allocation6], %s2360_s23, %s2360_s23, %s2361_s24  }
  0x47   :  { %s2283_s13 = scalar_lea.hbm %s2693_s6, 24576 }
  0x48   :  { %p2284_p4 = scmp.ne.s32.totalorder %s2693_s6, %s2283_s13  ;;  %p2287_p5 = scmp.lt.u32.totalorder %s2283_s13, %s2693_s6 }
  0x4a   :  { %p2289_p6 = pnand %p2287_p5, %p2284_p4 }
  0x4c   :  { %2292 = shalt.err (!%p2289_p6)
}
  0x4d   :  { %s2293_s1 = scalar_lea.vmem %s78_s18, 24576  ;;  %p2298_p8 = scmp.lt.s32.totalorder %s78_s18, %s78_s18 }
  0x4e   :  { %p2294_p7 = scmp.ne.s32.totalorder %s78_s18, %s2293_s1  ;;  %p2299_p9 = scmp.lt.s32.totalorder %s2293_s1, %s2293_s1 }
  0x50   :  { %p2300_p10 = por %p2299_p9, %p2298_p8 }
  0x52   :  { %p2301_p11 = pnand %p2300_p10, %p2294_p7 }
  0x54   :  { %2304 = shalt.err (!%p2301_p11)
}
  0x55   :  { %83 = dma.hbm_to_vmem [thread:$0]  %s2693_s6, 24576, %s78_s18, [#allocation9], %s2364_s14, %s2364_s14, %s2365_s19  }
  0x56   :  { %s2368_s24 = smov [#allocation11]   ;;  %s2305_s22 = scalar_lea.hbm %s2695_s8, 16384 }
  0x57   :  { %s91_s16 = sshll.u32 %s2368_s24, 4  ;;  %p2306_p12 = scmp.ne.s32.totalorder %s2695_s8, %s2305_s22  ;;  %s92_s16 = int_to_ptr.vmem [resolvable:$true] %s91_s16 }
  0x58   :  { %p2309_p13 = scmp.lt.u32.totalorder %s2305_s22, %s2695_s8 }
  0x5a   :  { %p2311_p0 = pnand %p2309_p13, %p2306_p12 }
  0x5c   :  { %2314 = shalt.err (!%p2311_p0)
}
  0x5d   :  { %s2315_s30 = scalar_lea.vmem %s92_s16, 16384  ;;  %p2320_p2 = scmp.lt.s32.totalorder %s92_s16, %s92_s16 }
  0x5e   :  { %p2316_p1 = scmp.ne.s32.totalorder %s92_s16, %s2315_s30  ;;  %p2321_p3 = scmp.lt.s32.totalorder %s2315_s30, %s2315_s30 }
  0x60   :  { %p2322_p4 = por %p2321_p3, %p2320_p2 }
  0x62   :  { %p2323_p5 = pnand %p2322_p4, %p2316_p1 }
  0x64   :  { %2326 = shalt.err (!%p2323_p5)
}
  0x65   :  { %s2369_s6 = smov 512   ;;  %s2370_s14 = smov 32  }
  0x66   :  { %97 = dma.hbm_to_vmem [thread:$0]  %s2695_s8, 16384, %s92_s16, [#allocation12], %s2369_s6, %s2369_s6, %s2370_s14  }
  0x67   :  { %2349 = dma.done.wait [#allocation3], 512  }
  0x68   :  { %2350 = vsyncadd [#allocation3], 4294966784 }
  0x69   :  { %2351 = dma.done.wait [#allocation6], 4352  }
  0x6a   :  { %2352 = vsyncadd [#allocation6], 4294962944 }
  0x6b   :  { %2353 = dma.done.wait [#allocation9], 49152  }
  0x6c   :  { %2354 = vsyncadd [#allocation9], 4294918144 }
  0x6d   :  { %2355 = dma.done.wait [#allocation12], 16384  }
  0x6e   :  { %2356 = vsyncadd [#allocation12], 4294950912  ;;  %v138_v0 = vld [vmem:[#allocation7 + $0x80] sm:$0xff]  ;;  %v139_v1 = vld [vmem:[#allocation7 + $0x88] sm:$0xff]  ;;  %vm273_vm0 = vcmask 1040384   ;;  %vm290_vm3 = vcmask 1046528  }
  0x6f   :  { %v122_v2 = vld [vmem:[#allocation7] sm:$0xff]  ;;  %v1612_v3 = vpack.c.bf16 %v139_v1, %v138_v0  ;;  %v123_v4 = vld [vmem:[#allocation7 + $0x8] sm:$0xff]  ;;  %v140_v5 = vld [vmem:[#allocation7 + $0x90] sm:$0xff]  ;;  %s2371_s4 = smov [#allocation13]  }
  0x70   :  { %v141_v6 = vld [vmem:[#allocation7 + $0x98] sm:$0xff]  ;;  %v1614_v7 = vpack.c.bf16 %v123_v4, %v122_v2  ;;  %v124_v9 = vld [vmem:[#allocation7 + $0x10] sm:$0xff]  ;;  %v142_v11 = vld [vmem:[#allocation7 + $0xa0] sm:$0xff] }
  0x71   :  { %v1616_v8 = vpack.c.bf16 %v141_v6, %v140_v5  ;;  %v125_v10 = vld [vmem:[#allocation7 + $0x18] sm:$0xff]  ;;  %1613 = vmatprep.subr.bf16.mxu0 %v1612_v3  ;;  %v143_v12 = vld [vmem:[#allocation7 + $0xa8] sm:$0xff]  ;;  %v126_v15 = vld [vmem:[#allocation7 + $0x20] sm:$0xff] }
  0x72   :  { %1615 = vmatpush3.bf16.msra.mxu0 %v1614_v7  ;;  %v1618_v13 = vpack.c.bf16 %v125_v10, %v124_v9  ;;  %v1620_v14 = vpack.c.bf16 %v143_v12, %v142_v11  ;;  %v127_v16 = vld [vmem:[#allocation7 + $0x28] sm:$0xff]  ;;  %v144_v17 = vld [vmem:[#allocation7 + $0xb0] sm:$0xff]  ;;  %v145_v18 = vld [vmem:[#allocation7 + $0xb8] sm:$0xff] }
  0x73   :  { %1617 = vmatprep.subr.bf16.mxu0 %v1616_v8  ;;  %v1622_v19 = vpack.c.bf16 %v127_v16, %v126_v15  ;;  %v1624_v20 = vpack.c.bf16 %v145_v18, %v144_v17  ;;  %v128_v21 = vld [vmem:[#allocation7 + $0x30] sm:$0xff]  ;;  %v129_v22 = vld [vmem:[#allocation7 + $0x38] sm:$0xff]  ;;  %v146_v23 = vld [vmem:[#allocation7 + $0xc0] sm:$0xff] }
  0x74   :  { %v147_v24 = vld [vmem:[#allocation7 + $0xc8] sm:$0xff]  ;;  %v119_v25 = vld [vmem:[#allocation2 + $0x8] sm:$0xff]  ;;  %v130_v26 = vld [vmem:[#allocation7 + $0x40] sm:$0xff]  ;;  %v1626_v28 = vpack.c.bf16 %v129_v22, %v128_v21 }
  0x75   :  { %v131_v27 = vld [vmem:[#allocation7 + $0x48] sm:$0xff]  ;;  %225 = vmatprep.mubr.f32.mxu0 %v119_v25  ;;  %v148_v29 = vld [vmem:[#allocation7 + $0xd0] sm:$0xff]  ;;  %v149_v30 = vld [vmem:[#allocation7 + $0xd8] sm:$0xff]  ;;  %v1628_v34 = vpack.c.bf16 %v147_v24, %v146_v23 }
  0x76   :  { %1619 = vmatpush3.bf16.msra.mxu0 %v1618_v13  ;;  %v308_v31 = vld [vmem:[#allocation8 + $0x8] sm:$0xff]  ;;  %v310_v32 = vld [vmem:[#allocation8 + $0x18] sm:$0xff]  ;;  %v307_v33 = vld [vmem:[#allocation8] sm:$0xff]  ;;  %v1630_v45 = vpack.c.bf16 %v131_v27, %v130_v26  ;;  %v1632_v49 = vpack.c.bf16 %v149_v30, %v148_v29 }
  0x77   :  { %1621 = vmatprep.subr.bf16.mxu0 %v1620_v14  ;;  %v1644_v35 = vpack.c.bf16 %v310_v32, %v308_v31  ;;  %v309_v36 = vld [vmem:[#allocation8 + $0x10] sm:$0xff]  ;;  %v312_v37 = vld [vmem:[#allocation8 + $0x28] sm:$0xff]  ;;  %v314_v38 = vld [vmem:[#allocation8 + $0x38] sm:$0xff] }
  0x78   :  { %v1646_v39 = vpack.c.bf16 %v309_v36, %v307_v33  ;;  %v1648_v40 = vpack.c.bf16 %v314_v38, %v312_v37  ;;  %v311_v41 = vld [vmem:[#allocation8 + $0x20] sm:$0xff]  ;;  %v313_v42 = vld [vmem:[#allocation8 + $0x30] sm:$0xff]  ;;  %v316_v43 = vld [vmem:[#allocation8 + $0x48] sm:$0xff] }
  0x79   :  { %1645 = vmatprep.subr.bf16.mxu1 %v1644_v35  ;;  %v318_v44 = vld [vmem:[#allocation8 + $0x58] sm:$0xff]  ;;  %v132_v46 = vld [vmem:[#allocation7 + $0x50] sm:$0xff]  ;;  %v1650_v48 = vpack.c.bf16 %v313_v42, %v311_v41  ;;  %v150_v50 = vld [vmem:[#allocation7 + $0xe0] sm:$0xff] }
  0x7a   :  { %1623 = vmatpush3.bf16.msra.mxu0 %v1622_v19  ;;  %v133_v47 = vld [vmem:[#allocation7 + $0x58] sm:$0xff]  ;;  %1647 = vmatpush1.bf16.msra.mxu1 %v1646_v39  ;;  %v1652_v51 = vpack.c.bf16 %v318_v44, %v316_v43  ;;  %v315_v52 = vld [vmem:[#allocation8 + $0x40] sm:$0xff]  ;;  %v317_v53 = vld [vmem:[#allocation8 + $0x50] sm:$0xff] }
  0x7b   :  { %1625 = vmatprep.subr.bf16.mxu0 %v1624_v20  ;;  %1649 = vmatprep.subr.bf16.mxu1 %v1648_v40  ;;  %v151_v54 = vld [vmem:[#allocation7 + $0xe8] sm:$0xff]  ;;  %v322_v56 = vld [vmem:[#allocation8 + $0x78] sm:$0xff]  ;;  %v1634_v57 = vpack.c.bf16 %v133_v47, %v132_v46  ;;  %v134_v58 = vld [vmem:[#allocation7 + $0x60] sm:$0xff]  ;;  %v1654_v60 = vpack.c.bf16 %v317_v53, %v315_v52 }
  0x7c   :  { %v320_v55 = vld [vmem:[#allocation8 + $0x68] sm:$0xff]  ;;  %v1636_v61 = vpack.c.bf16 %v151_v54, %v150_v50  ;;  %v152_v62 = vld [vmem:[#allocation7 + $0xf0] sm:$0xff]  ;;  %v319_v0 = vld [vmem:[#allocation8 + $0x60] sm:$0xff] }
  0x7d   :  { %v135_v59 = vld [vmem:[#allocation7 + $0x68] sm:$0xff]  ;;  %v1656_v63 = vpack.c.bf16 %v322_v56, %v320_v55  ;;  %v321_v1 = vld [vmem:[#allocation8 + $0x70] sm:$0xff]  ;;  %v153_v2 = vld [vmem:[#allocation7 + $0xf8] sm:$0xff] }
  0x7e   :  { %1627 = vmatpush3.bf16.msra.mxu0 %v1626_v28  ;;  %1651 = vmatpush1.bf16.msra.mxu1 %v1650_v48  ;;  %v324_v3 = vld [vmem:[#allocation8 + $0x88] sm:$0xff]  ;;  %v326_v4 = vld [vmem:[#allocation8 + $0x98] sm:$0xff]  ;;  %v1638_v5 = vpack.c.bf16 %v135_v59, %v134_v58  ;;  %v136_v6 = vld [vmem:[#allocation7 + $0x70] sm:$0xff]  ;;  %v1658_v7 = vpack.c.bf16 %v321_v1, %v319_v0  ;;  %v1640_v8 = vpack.c.bf16 %v153_v2, %v152_v62 }
  0x7f   :  { %1629 = vmatprep.subr.bf16.mxu0 %v1628_v34  ;;  %1653 = vmatprep.subr.bf16.mxu1 %v1652_v51  ;;  %v137_v9 = vld [vmem:[#allocation7 + $0x78] sm:$0xff]  ;;  %v1660_v10 = vpack.c.bf16 %v326_v4, %v324_v3  ;;  %v323_v11 = vld [vmem:[#allocation8 + $0x80] sm:$0xff]  ;;  %v325_v12 = vld [vmem:[#allocation8 + $0x90] sm:$0xff] }
  0x80   :  { %v328_v13 = vld [vmem:[#allocation8 + $0xa8] sm:$0xff]  ;;  %v330_v14 = vld [vmem:[#allocation8 + $0xb8] sm:$0xff]  ;;  %v1642_v15 = vpack.c.bf16 %v137_v9, %v136_v6  ;;  %v1662_v16 = vpack.c.bf16 %v325_v12, %v323_v11  ;;  %v327_v18 = vld [vmem:[#allocation8 + $0xa0] sm:$0xff] }
  0x81   :  { %v1664_v17 = vpack.c.bf16 %v330_v14, %v328_v13  ;;  %v329_v19 = vld [vmem:[#allocation8 + $0xb0] sm:$0xff]  ;;  %v332_v20 = vld [vmem:[#allocation8 + $0xc8] sm:$0xff]  ;;  %v334_v21 = vld [vmem:[#allocation8 + $0xd8] sm:$0xff] }
  0x82   :  { %1631 = vmatpush3.bf16.msra.mxu0 %v1630_v45  ;;  %1655 = vmatpush1.bf16.msra.mxu1 %v1654_v60  ;;  %v118_v22 = vld [vmem:[#allocation2] sm:$0xff]  ;;  %v1666_v23 = vpack.c.bf16 %v329_v19, %v327_v18  ;;  %v121_v24 = vld [vmem:[#allocation2 + $0x18] sm:$0xff]  ;;  %v1668_v25 = vpack.c.bf16 %v334_v21, %v332_v20  ;;  %v331_v26 = vld [vmem:[#allocation8 + $0xc0] sm:$0xff] }
  0x83   :  { %1633 = vmatprep.subr.bf16.mxu0 %v1632_v49  ;;  %1657 = vmatprep.subr.bf16.mxu1 %v1656_v63  ;;  %v333_v27 = vld [vmem:[#allocation8 + $0xd0] sm:$0xff]  ;;  %v336_v28 = vld [vmem:[#allocation8 + $0xe8] sm:$0xff]  ;;  %v338_v29 = vld [vmem:[#allocation8 + $0xf8] sm:$0xff] }
  0x84   :  { %v120_v30 = vld [vmem:[#allocation2 + $0x10] sm:$0xff]  ;;  %v1670_v31 = vpack.c.bf16 %v333_v27, %v331_v26  ;;  %v1672_v32 = vpack.c.bf16 %v338_v29, %v336_v28  ;;  %v337_v34 = vld [vmem:[#allocation8 + $0xf0] sm:$0xff]  ;;  %v340_v35 = vld [vmem:[#allocation8 + $0x108] sm:$0xff] }
  0x85   :  { %v335_v33 = vld [vmem:[#allocation8 + $0xe0] sm:$0xff]  ;;  %v342_v36 = vld [vmem:[#allocation8 + $0x118] sm:$0xff]  ;;  %v341_v40 = vld [vmem:[#allocation8 + $0x110] sm:$0xff] }
  0x86   :  { %1635 = vmatpush3.bf16.msra.mxu0 %v1634_v57  ;;  %1659 = vmatpush1.bf16.msra.mxu1 %v1658_v7  ;;  %v1674_v37 = vpack.c.bf16 %v337_v34, %v335_v33  ;;  %v1676_v38 = vpack.c.bf16 %v342_v36, %v340_v35  ;;  %v339_v39 = vld [vmem:[#allocation8 + $0x100] sm:$0xff]  ;;  %v344_v41 = vld [vmem:[#allocation8 + $0x128] sm:$0xff]  ;;  %v346_v42 = vld [vmem:[#allocation8 + $0x138] sm:$0xff] }
  0x87   :  { %1637 = vmatprep.subr.bf16.mxu0 %v1636_v61  ;;  %1661 = vmatprep.subr.bf16.mxu1 %v1660_v10  ;;  %v1678_v43 = vpack.c.bf16 %v341_v40, %v339_v39  ;;  %v1680_v44 = vpack.c.bf16 %v346_v42, %v344_v41  ;;  %v343_v45 = vld [vmem:[#allocation8 + $0x120] sm:$0xff]  ;;  %v345_v46 = vld [vmem:[#allocation8 + $0x130] sm:$0xff]  ;;  %v348_v47 = vld [vmem:[#allocation8 + $0x148] sm:$0xff] }
  0x88   :  { %v350_v48 = vld [vmem:[#allocation8 + $0x158] sm:$0xff]  ;;  %v1682_v49 = vpack.c.bf16 %v345_v46, %v343_v45  ;;  %v347_v51 = vld [vmem:[#allocation8 + $0x140] sm:$0xff]  ;;  %v349_v52 = vld [vmem:[#allocation8 + $0x150] sm:$0xff] }
  0x89   :  { %v1684_v50 = vpack.c.bf16 %v350_v48, %v348_v47  ;;  %v352_v53 = vld [vmem:[#allocation8 + $0x168] sm:$0xff]  ;;  %v354_v54 = vld [vmem:[#allocation8 + $0x178] sm:$0xff]  ;;  %v1686_v55 = vpack.c.bf16 %v349_v52, %v347_v51  ;;  %v351_v57 = vld [vmem:[#allocation8 + $0x160] sm:$0xff] }
  0x8a   :  { %1639 = vmatpush3.bf16.msra.mxu0 %v1638_v5  ;;  %1663 = vmatpush1.bf16.msra.mxu1 %v1662_v16  ;;  %v1688_v56 = vpack.c.bf16 %v354_v54, %v352_v53  ;;  %v353_v58 = vld [vmem:[#allocation8 + $0x170] sm:$0xff]  ;;  %v356_v59 = vld [vmem:[#allocation8 + $0x188] sm:$0xff]  ;;  %v358_v60 = vld [vmem:[#allocation8 + $0x198] sm:$0xff]  ;;  %v238_v16 = vlaneseq }
  0x8b   :  { %1641 = vmatprep.subr.bf16.mxu0 %v1640_v8  ;;  %1665 = vmatprep.subr.bf16.mxu1 %v1664_v17  ;;  %v1690_v61 = vpack.c.bf16 %v353_v58, %v351_v57  ;;  %v1692_v62 = vpack.c.bf16 %v358_v60, %v356_v59  ;;  %v355_v63 = vld [vmem:[#allocation8 + $0x180] sm:$0xff]  ;;  %v357_v0 = vld [vmem:[#allocation8 + $0x190] sm:$0xff]  ;;  %v360_v1 = vld [vmem:[#allocation8 + $0x1a8] sm:$0xff] }
  0x8c   :  { %v362_v2 = vld [vmem:[#allocation8 + $0x1b8] sm:$0xff]  ;;  %v1694_v3 = vpack.c.bf16 %v357_v0, %v355_v63  ;;  %v359_v5 = vld [vmem:[#allocation8 + $0x1a0] sm:$0xff]  ;;  %v361_v6 = vld [vmem:[#allocation8 + $0x1b0] sm:$0xff]  ;;  %v2517_v21 = vshrl.u32 %v238_v16, 7 }
  0x8d   :  { %v1696_v4 = vpack.c.bf16 %v362_v2, %v360_v1  ;;  %v1698_v7 = vpack.c.bf16 %v361_v6, %v359_v5  ;;  %v364_v8 = vld [vmem:[#allocation8 + $0x1c8] sm:$0xff]  ;;  %v366_v9 = vld [vmem:[#allocation8 + $0x1d8] sm:$0xff]  ;;  %v363_v11 = vld [vmem:[#allocation8 + $0x1c0] sm:$0xff] }
  0x8e   :  { %1643 = vmatpush3.bf16.msra.mxu0 %v1642_v15  ;;  %1667 = vmatpush1.bf16.msra.mxu1 %v1666_v23  ;;  %v1700_v10 = vpack.c.bf16 %v366_v9, %v364_v8  ;;  %v365_v12 = vld [vmem:[#allocation8 + $0x1d0] sm:$0xff]  ;;  %v368_v14 = vld [vmem:[#allocation8 + $0x1e8] sm:$0xff]  ;;  %v370_v15 = vld [vmem:[#allocation8 + $0x1f8] sm:$0xff]  ;;  %v245_v23 = vand.u32 7, %v2517_v21 }
  0x8f   :  { %1669 = vmatprep.subr.bf16.mxu1 %v1668_v25  ;;  %v1702_v13 = vpack.c.bf16 %v365_v12, %v363_v11  ;;  %v1704_v17 = vpack.c.bf16 %v370_v15, %v368_v14  ;;  %v367_v18 = vld [vmem:[#allocation8 + $0x1e0] sm:$0xff]  ;;  %v369_v19 = vld [vmem:[#allocation8 + $0x1f0] sm:$0xff]  ;;  %v372_v25 = vld [vmem:[#allocation8 + $0x208] sm:$0xff] }
  0x90   :  { %v1706_v20 = vpack.c.bf16 %v369_v19, %v367_v18  ;;  %v374_v26 = vld [vmem:[#allocation8 + $0x218] sm:$0xff]  ;;  %vm2525_vm1 = vcmp.ne.s32.totalorder %v245_v23, 0  ;;  %v1557_v33 = vld [vmem:[%s2690_s3] ss:$0 sm:$0xff]  ;;  %v371_v36 = vld [vmem:[#allocation8 + $0x200] sm:$0xff]  ;;  %vm2570_vm4 = vcmp.ne.s32.totalorder %v245_v23, 7 }
  0x91   :  { %226 = vmatmul.mubr.f32.vlgmr.msra.gmra.mrb[0].mxu0 %v118_v22  ;;  %v2519_v22 = vld [vmem:[#allocation5] sm:$0xff]  ;;  %v1708_v27 = vpack.c.bf16 %v374_v26, %v372_v25  ;;  %v376_v42 = vld [vmem:[#allocation8 + $0x228] sm:$0xff]  ;;  %v375_v51 = vld [vmem:[#allocation8 + $0x220] sm:$0xff] }
  0x92   :  { %230 = vmatprep.mubr.f32.mxu0 %v121_v24  ;;  %1671 = vmatpush1.bf16.msra.mxu1 %v1670_v31  ;;  %v275_v24 = vrot.slane %v2519_v22, 7  ;;  %v377_v52 = vld [vmem:[#allocation8 + $0x230] sm:$0xff]  ;;  %v379_v60 = vld [vmem:[#allocation8 + $0x240] sm:$0xff]  ;;  %v384_v63 = vld [vmem:[#allocation8 + $0x268] sm:$0xff] }
  0x93   :  { %1673 = vmatprep.subr.bf16.mxu1 %v1672_v32  ;;  %v2535_v32 = vld [vmem:[#allocation5 + $0x8] sm:$0xff]  ;;  %v1714_v58 = vpack.c.bf16 %v377_v52, %v375_v51  ;;  %v383_v1 = vld [vmem:[#allocation8 + $0x260] sm:$0xff]  ;;  %v385_v2 = vld [vmem:[#allocation8 + $0x270] sm:$0xff] }
  0x94   :  { %v285_v29 = vsel %vm273_vm0, 0.0, %v275_v24  ;;  %v278_v39 = vrot.slane %v2535_v32, 7  ;;  %v386_v0 = vld [vmem:[#allocation8 + $0x278] sm:$0xff]  ;;  %v782_v5 = vld [vmem:[#allocation10] sm:$0xff]  ;;  %v784_v8 = vld [vmem:[#allocation10 + $0x10] sm:$0xff] }
  0x95   :  { %231 = vmatmul.mubr.f32.gmra.mrb[2].mxu0 %v120_v30  ;;  %1558 = vmatprep.mubr.msk.f32.mxu1 %vm2525_vm1, %v285_v29  ;;  %v2533_v30 = vadd.s32 8, %v2517_v21  ;;  %v787_v9 = vld [vmem:[#allocation10 + $0x28] sm:$0xff]  ;;  %v1720_v11 = vpack.c.bf16 %v386_v0, %v384_v63  ;;  %v1838_v12 = vpack.c.bf16 %v784_v8, %v782_v5  ;;  %v786_v14 = vld [vmem:[#allocation10 + $0x20] sm:$0xff]  ;;  %v788_v15 = vld [vmem:[#allocation10 + $0x30] sm:$0xff] }
  0x96   :  { %1675 = vmatpush1.bf16.msra.mxu1 %v1674_v37  ;;  %v373_v37 = vld [vmem:[#allocation8 + $0x210] sm:$0xff]  ;;  %v791_v16 = vld [vmem:[#allocation10 + $0x48] sm:$0xff]  ;;  %v390_v18 = vld [vmem:[#allocation8 + $0x298] sm:$0xff] }
  0x97   :  { %1677 = vmatprep.subr.bf16.mxu1 %v1676_v38  ;;  %v252_v38 = vand.u32 7, %v2533_v30  ;;  %v1710_v47 = vpack.c.bf16 %v373_v37, %v371_v36  ;;  %v793_v19 = vld [vmem:[#allocation10 + $0x58] sm:$0xff]  ;;  %v387_v25 = vld [vmem:[#allocation8 + $0x280] sm:$0xff]  ;;  %v792_v29 = vld [vmem:[#allocation10 + $0x50] sm:$0xff] }
  0x98   :  { %v1844_v26 = vpack.c.bf16 %v793_v19, %v791_v16  ;;  %v392_v36 = vld [vmem:[#allocation8 + $0x2a8] sm:$0xff]  ;;  %v394_v37 = vld [vmem:[#allocation8 + $0x2b8] sm:$0xff]  ;;  %v403_v16 = vld [vmem:[#allocation8 + $0x300] sm:$0xff] }
  0x99   :  { %vm2547_vm2 = vcmp.ne.s32.totalorder %v252_v38, 0  ;;  %v396_v51 = vld [vmem:[#allocation8 + $0x2c8] sm:$0xff]  ;;  %v398_v52 = vld [vmem:[#allocation8 + $0x2d8] sm:$0xff]  ;;  %v808_v19 = vld [vmem:[#allocation10 + $0xd0] sm:$0xff]  ;;  %vm2584_vm5 = vcmp.ne.s32.totalorder %v252_v38, 7 }
  0x9a   :  { %1679 = vmatpush1.bf16.msra.mxu1 %v1678_v43  ;;  %v378_v43 = vld [vmem:[#allocation8 + $0x238] sm:$0xff]  ;;  %v400_v0 = vld [vmem:[#allocation8 + $0x2e8] sm:$0xff]  ;;  %v449_v23 = vld [vmem:[#allocation8 + $0x470] sm:$0xff] }
  0x9b   :  { %1681 = vmatprep.subr.bf16.mxu1 %v1680_v44  ;;  %v805_v63 = vld [vmem:[#allocation10 + $0xb8] sm:$0xff]  ;;  %v839_v30 = vld [vmem:[#allocation10 + $0x1c8] sm:$0xff] }
  0x9c   :  { %v841_v38 = vld [vmem:[#allocation10 + $0x1d8] sm:$0xff]  ;;  %v1226_v28 = vld [vmem:[#allocation11 + $0x8] sm:$0xff] }
  0x9d   :  { %v1238_v48 = vld [vmem:[#allocation11 + $0x68] sm:$0xff] }
  0x9e   :  { %1683 = vmatpush1.bf16.msra.mxu1 %v1682_v49  ;;  %v279_v49 = vsel %vm273_vm0, %v275_v24, %v278_v39  ;;  %v1722_v24 = vpack.c.bf16 %v385_v2, %v383_v1  ;;  %v402_v1 = vld [vmem:[#allocation8 + $0x2f8] sm:$0xff] }
  0x9f   :  { %1685 = vmatprep.subr.bf16.mxu1 %v1684_v50  ;;  %v1712_v50 = vpack.c.bf16 %v378_v43, %v376_v42  ;;  %v391_v42 = vld [vmem:[#allocation8 + $0x2a0] sm:$0xff]  ;;  %v1736_v8 = vpack.c.bf16 %v402_v1, %v400_v0  ;;  %v820_v1 = vld [vmem:[#allocation10 + $0x130] sm:$0xff] }
  0xa0   :  { %v818_v0 = vld [vmem:[#allocation10 + $0x120] sm:$0xff] }
  0xa2   :  { %1687 = vmatpush1.bf16.msra.mxu1 %v1686_v55  ;;  %v380_v55 = vld [vmem:[#allocation8 + $0x248] sm:$0xff] }
  0xa3   :  { %1689 = vmatprep.subr.bf16.mxu1 %v1688_v56  ;;  %v382_v56 = vld [vmem:[#allocation8 + $0x258] sm:$0xff] }
  0xa4   :  { %v1716_v59 = vpack.c.bf16 %v382_v56, %v380_v55  ;;  %v395_v56 = vld [vmem:[#allocation8 + $0x2c0] sm:$0xff] }
  0xa6   :  { %1691 = vmatpush1.bf16.msra.mxu1 %v1690_v61  ;;  %v381_v61 = vld [vmem:[#allocation8 + $0x250] sm:$0xff] }
  0xa7   :  { %1693 = vmatprep.subr.bf16.mxu1 %v1692_v62  ;;  %v1718_v6 = vpack.c.bf16 %v381_v61, %v379_v60  ;;  %v1732_v60 = vpack.c.bf16 %v398_v52, %v396_v51  ;;  %v397_v61 = vld [vmem:[#allocation8 + $0x2d0] sm:$0xff]  ;;  %v814_v51 = vld [vmem:[#allocation10 + $0x100] sm:$0xff] }
  0xa8   :  { %v816_v52 = vld [vmem:[#allocation10 + $0x110] sm:$0xff] }
  0xaa   :  { %1695 = vmatpush1.bf16.msra.mxu1 %v1694_v3  ;;  %v783_v3 = vld [vmem:[#allocation10 + $0x8] sm:$0xff] }
  0xab   :  { %1697 = vmatprep.subr.bf16.mxu1 %v1696_v4  ;;  %v785_v4 = vld [vmem:[#allocation10 + $0x18] sm:$0xff] }
  0xae   :  { %1699 = vmatpush1.bf16.msra.mxu1 %v1698_v7  ;;  %v1836_v7 = vpack.c.bf16 %v785_v4, %v783_v3  ;;  %v1734_v3 = vpack.c.bf16 %v397_v61, %v395_v56  ;;  %v399_v4 = vld [vmem:[#allocation8 + $0x2e0] sm:$0xff]  ;;  %v819_v56 = vld [vmem:[#allocation10 + $0x128] sm:$0xff] }
  0xaf   :  { %1701 = vmatprep.subr.bf16.mxu1 %v1700_v10  ;;  %v789_v10 = vld [vmem:[#allocation10 + $0x38] sm:$0xff] }
  0xb0   :  { %1837 = vmatprep.subr.bf16.mxu0 %v1836_v7  ;;  %v804_v7 = vld [vmem:[#allocation10 + $0xb0] sm:$0xff] }
  0xb1   :  { %1839 = vmatpush1.bf16.msra.mxu0 %v1838_v12  ;;  %v404_v12 = vld [vmem:[#allocation8 + $0x308] sm:$0xff] }
  0xb2   :  { %1703 = vmatpush1.bf16.msra.mxu1 %v1702_v13  ;;  %v1840_v13 = vpack.c.bf16 %v789_v10, %v787_v9  ;;  %v401_v9 = vld [vmem:[#allocation8 + $0x2f0] sm:$0xff]  ;;  %v807_v10 = vld [vmem:[#allocation10 + $0xc8] sm:$0xff] }
  0xb3   :  { %1705 = vmatprep.subr.bf16.mxu1 %v1704_v17  ;;  %v388_v17 = vld [vmem:[#allocation8 + $0x288] sm:$0xff] }
  0xb4   :  { %1841 = vmatprep.subr.bf16.mxu0 %v1840_v13  ;;  %v406_v13 = vld [vmem:[#allocation8 + $0x318] sm:$0xff] }
  0xb6   :  { %1707 = vmatpush1.bf16.msra.mxu1 %v1706_v20  ;;  %v1842_v20 = vpack.c.bf16 %v788_v15, %v786_v14  ;;  %v1738_v15 = vpack.c.bf16 %v401_v9, %v399_v4  ;;  %v823_v4 = vld [vmem:[#allocation10 + $0x148] sm:$0xff] }
  0xb7   :  { %1709 = vmatprep.subr.bf16.mxu1 %v1708_v27  ;;  %v790_v27 = vld [vmem:[#allocation10 + $0x40] sm:$0xff] }
  0xb8   :  { %1843 = vmatpush1.bf16.msra.mxu0 %v1842_v20  ;;  %v1846_v39 = vpack.c.bf16 %v792_v29, %v790_v27  ;;  %v1740_v20 = vpack.c.bf16 %v406_v13, %v404_v12  ;;  %v408_v27 = vld [vmem:[#allocation8 + $0x328] sm:$0xff]  ;;  %v410_v29 = vld [vmem:[#allocation8 + $0x338] sm:$0xff]  ;;  %v822_v12 = vld [vmem:[#allocation10 + $0x140] sm:$0xff] }
  0xb9   :  { %1845 = vmatprep.subr.bf16.mxu0 %v1844_v26  ;;  %v813_v26 = vld [vmem:[#allocation10 + $0xf8] sm:$0xff]  ;;  %v824_v13 = vld [vmem:[#allocation10 + $0x150] sm:$0xff] }
  0xbc   :  { %1847 = vmatpush1.bf16.msra.mxu0 %v1846_v39  ;;  %v1744_v39 = vpack.c.bf16 %v410_v29, %v408_v27  ;;  %v826_v27 = vld [vmem:[#allocation10 + $0x160] sm:$0xff]  ;;  %v828_v29 = vld [vmem:[#allocation10 + $0x170] sm:$0xff] }
 0x164   :  { %v1606_v31 = vpop.f32.mrb[0].mxu0 }
 0x165   :  { %v1607_v34 = vpop.f32.mrb[1].mxu0 }
 0x166   :  { %v1608_v35 = vadd.f32 %v1607_v34, %v1606_v31  ;;  %v1724_v31 = vpack.c.bf16 %v390_v18, %v388_v17  ;;  %v795_v34 = vld [vmem:[#allocation10 + $0x68] sm:$0xff]  ;;  %v806_v18 = vld [vmem:[#allocation10 + $0xc0] sm:$0xff] }
 0x168   :  { %v2542_v40 = vadd.f32 %v1608_v35, %v1557_v33  ;;  %v1609_v41 = vpop.f32.mrb[2].mxu0  ;;  %v797_v35 = vld [vmem:[#allocation10 + $0x78] sm:$0xff] }
 0x169   :  { %v1610_v44 = vpop.f32.mrb[3].mxu0  ;;  %v1848_v43 = vpack.c.bf16 %v797_v35, %v795_v34  ;;  %v407_v34 = vld [vmem:[#allocation8 + $0x320] sm:$0xff] }
 0x16a   :  { %v1611_v45 = vadd.f32 %v1610_v44, %v1609_v41  ;;  %v274_v46 = vrot.slane %v2542_v40, 7  ;;  %v794_v44 = vld [vmem:[#allocation10 + $0x60] sm:$0xff] }
 0x16b   :  { %1849 = vmatprep.subr.bf16.mxu0 %v1848_v43  ;;  %v817_v43 = vld [vmem:[#allocation10 + $0x118] sm:$0xff] }
 0x16c   :  { %v2552_v53 = vadd.f32 %v1611_v45, %v1557_v33  ;;  %v284_v54 = vsel %vm273_vm0, 0.0, %v274_v46  ;;  %v389_v33 = vld [vmem:[#allocation8 + $0x290] sm:$0xff] }
 0x16d   :  { %1559 = vmatmul.mubr.msk.f32.vlgmr.msra.gmra.mrb[0].mxu1 %vm2525_vm1, %v284_v54  ;;  %v1726_v41 = vpack.c.bf16 %v389_v33, %v387_v25  ;;  %v796_v45 = vld [vmem:[#allocation10 + $0x70] sm:$0xff]  ;;  %v811_v25 = vld [vmem:[#allocation10 + $0xe8] sm:$0xff] }
 0x16e   :  { %1711 = vmatpush1.bf16.msra.mxu1 %v1710_v47  ;;  %1560 = vmatprep.mubr.msk.f32.mxu1 %vm2547_vm2, %v279_v49  ;;  %v276_v57 = vrot.slane %v2552_v53, 7  ;;  %v393_v47 = vld [vmem:[#allocation8 + $0x2b0] sm:$0xff]  ;;  %v799_v49 = vld [vmem:[#allocation10 + $0x88] sm:$0xff]  ;;  %v1850_v54 = vpack.c.bf16 %v796_v45, %v794_v44  ;;  %v1864_v35 = vpack.c.bf16 %v813_v26, %v811_v25  ;;  %v414_v45 = vld [vmem:[#allocation8 + $0x358] sm:$0xff] }
 0x16f   :  { %1713 = vmatprep.subr.bf16.mxu1 %v1712_v50  ;;  %v801_v50 = vld [vmem:[#allocation10 + $0x98] sm:$0xff]  ;;  %v1730_v55 = vpack.c.bf16 %v393_v47, %v391_v42  ;;  %v815_v42 = vld [vmem:[#allocation10 + $0x108] sm:$0xff]  ;;  %v423_v25 = vld [vmem:[#allocation8 + $0x3a0] sm:$0xff] }
 0x170   :  { %v277_v62 = vsel %vm273_vm0, %v274_v46, %v276_v57  ;;  %v1728_v46 = vpack.c.bf16 %v394_v37, %v392_v36  ;;  %v1852_v57 = vpack.c.bf16 %v801_v50, %v799_v49  ;;  %1851 = vmatpush1.bf16.msra.mxu0 %v1850_v54  ;;  %v810_v36 = vld [vmem:[#allocation10 + $0xe0] sm:$0xff]  ;;  %v812_v37 = vld [vmem:[#allocation10 + $0xf0] sm:$0xff]  ;;  %v412_v44 = vld [vmem:[#allocation8 + $0x348] sm:$0xff]  ;;  %v1868_v50 = vpack.c.bf16 %v817_v43, %v815_v42 }
 0x171   :  { %1561 = vmatmul.mubr.msk.f32.gmra.mrb[2].mxu1 %vm2547_vm2, %v277_v62  ;;  %v803_v62 = vld [vmem:[#allocation10 + $0xa8] sm:$0xff]  ;;  %v411_v49 = vld [vmem:[#allocation8 + $0x340] sm:$0xff]  ;;  %v1748_v54 = vpack.c.bf16 %v414_v45, %v412_v44  ;;  %v832_v45 = vld [vmem:[#allocation10 + $0x190] sm:$0xff] }
 0x172   :  { %1715 = vmatpush1.bf16.msra.mxu1 %v1714_v58  ;;  %652 = vmatprep.mubr.f32.mxu1 %v2519_v22  ;;  %v798_v58 = vld [vmem:[#allocation10 + $0x80] sm:$0xff]  ;;  %v1856_v5 = vpack.c.bf16 %v805_v63, %v803_v62 }
 0x173   :  { %1717 = vmatprep.subr.bf16.mxu1 %v1716_v59  ;;  %v800_v59 = vld [vmem:[#allocation10 + $0x90] sm:$0xff]  ;;  %1853 = vmatprep.subr.bf16.mxu0 %v1852_v57  ;;  %v821_v57 = vld [vmem:[#allocation10 + $0x138] sm:$0xff]  ;;  %v415_v62 = vld [vmem:[#allocation8 + $0x360] sm:$0xff] }
 0x174   :  { %v1854_v2 = vpack.c.bf16 %v800_v59, %v798_v58  ;;  %v416_v58 = vld [vmem:[#allocation8 + $0x368] sm:$0xff]  ;;  %v418_v59 = vld [vmem:[#allocation8 + $0x378] sm:$0xff]  ;;  %v1872_v63 = vpack.c.bf16 %v821_v57, %v819_v56  ;;  %v427_v42 = vld [vmem:[#allocation8 + $0x3c0] sm:$0xff] }
 0x175   :  { %v830_v44 = vld [vmem:[#allocation10 + $0x180] sm:$0xff] }
 0x176   :  { %1719 = vmatpush1.bf16.msra.mxu1 %v1718_v6  ;;  %v802_v6 = vld [vmem:[#allocation10 + $0xa0] sm:$0xff]  ;;  %1855 = vmatpush1.bf16.msra.mxu0 %v1854_v2  ;;  %v1752_v2 = vpack.c.bf16 %v418_v59, %v416_v58  ;;  %v836_v58 = vld [vmem:[#allocation10 + $0x1b0] sm:$0xff] }
 0x177   :  { %1721 = vmatprep.subr.bf16.mxu1 %v1720_v11  ;;  %v809_v11 = vld [vmem:[#allocation10 + $0xd8] sm:$0xff]  ;;  %v1858_v14 = vpack.c.bf16 %v804_v7, %v802_v6  ;;  %1857 = vmatprep.subr.bf16.mxu0 %v1856_v5  ;;  %v420_v6 = vld [vmem:[#allocation8 + $0x388] sm:$0xff]  ;;  %v834_v57 = vld [vmem:[#allocation10 + $0x1a0] sm:$0xff] }
 0x178   :  { %v1860_v17 = vpack.c.bf16 %v809_v11, %v807_v10  ;;  %v825_v5 = vld [vmem:[#allocation10 + $0x158] sm:$0xff]  ;;  %v419_v10 = vld [vmem:[#allocation8 + $0x380] sm:$0xff] }
 0x179   :  { %v422_v7 = vld [vmem:[#allocation8 + $0x398] sm:$0xff]  ;;  %v1876_v11 = vpack.c.bf16 %v825_v5, %v823_v4  ;;  %v437_v4 = vld [vmem:[#allocation8 + $0x410] sm:$0xff]  ;;  %v440_v5 = vld [vmem:[#allocation8 + $0x428] sm:$0xff] }
 0x17a   :  { %1723 = vmatpush1.bf16.msra.mxu1 %v1722_v24  ;;  %v405_v24 = vld [vmem:[#allocation8 + $0x310] sm:$0xff]  ;;  %1859 = vmatpush1.bf16.msra.mxu0 %v1858_v14  ;;  %v1756_v14 = vpack.c.bf16 %v422_v7, %v420_v6  ;;  %v442_v6 = vld [vmem:[#allocation8 + $0x438] sm:$0xff] }
 0x17b   :  { %1725 = vmatprep.subr.bf16.mxu1 %v1724_v31  ;;  %v1862_v31 = vpack.c.bf16 %v808_v19, %v806_v18  ;;  %v1742_v33 = vpack.c.bf16 %v405_v24, %v403_v16  ;;  %1861 = vmatprep.subr.bf16.mxu0 %v1860_v17  ;;  %v827_v16 = vld [vmem:[#allocation10 + $0x168] sm:$0xff]  ;;  %v829_v17 = vld [vmem:[#allocation10 + $0x178] sm:$0xff] }
 0x17c   :  { %v424_v18 = vld [vmem:[#allocation8 + $0x3a8] sm:$0xff]  ;;  %v426_v19 = vld [vmem:[#allocation8 + $0x3b8] sm:$0xff]  ;;  %v1880_v26 = vpack.c.bf16 %v829_v17, %v827_v16  ;;  %v443_v17 = vld [vmem:[#allocation8 + $0x440] sm:$0xff] }
 0x17e   :  { %1727 = vmatpush1.bf16.msra.mxu1 %v1726_v41  ;;  %v409_v41 = vld [vmem:[#allocation8 + $0x330] sm:$0xff]  ;;  %1863 = vmatpush1.bf16.msra.mxu0 %v1862_v31  ;;  %v1760_v31 = vpack.c.bf16 %v426_v19, %v424_v18 }
 0x17f   :  { %1729 = vmatprep.subr.bf16.mxu1 %v1728_v46  ;;  %v1866_v46 = vpack.c.bf16 %v812_v37, %v810_v36  ;;  %v1746_v47 = vpack.c.bf16 %v409_v41, %v407_v34  ;;  %1865 = vmatprep.subr.bf16.mxu0 %v1864_v35  ;;  %v831_v34 = vld [vmem:[#allocation10 + $0x188] sm:$0xff]  ;;  %v833_v35 = vld [vmem:[#allocation10 + $0x198] sm:$0xff]  ;;  %v445_v18 = vld [vmem:[#allocation8 + $0x450] sm:$0xff] }
 0x180   :  { %v428_v36 = vld [vmem:[#allocation8 + $0x3c8] sm:$0xff]  ;;  %v430_v37 = vld [vmem:[#allocation8 + $0x3d8] sm:$0xff]  ;;  %v1884_v43 = vpack.c.bf16 %v833_v35, %v831_v34  ;;  %v451_v35 = vld [vmem:[#allocation8 + $0x480] sm:$0xff] }
 0x182   :  { %1731 = vmatpush1.bf16.msra.mxu1 %v1730_v55  ;;  %v413_v55 = vld [vmem:[#allocation8 + $0x350] sm:$0xff]  ;;  %1867 = vmatpush1.bf16.msra.mxu0 %v1866_v46  ;;  %v1764_v46 = vpack.c.bf16 %v430_v37, %v428_v36  ;;  %v456_v37 = vld [vmem:[#allocation8 + $0x4a8] sm:$0xff] }
 0x183   :  { %1733 = vmatprep.subr.bf16.mxu1 %v1732_v60  ;;  %v1870_v60 = vpack.c.bf16 %v816_v52, %v814_v51  ;;  %v1750_v61 = vpack.c.bf16 %v413_v55, %v411_v49  ;;  %1869 = vmatprep.subr.bf16.mxu0 %v1868_v50  ;;  %v835_v49 = vld [vmem:[#allocation10 + $0x1a8] sm:$0xff]  ;;  %v837_v50 = vld [vmem:[#allocation10 + $0x1b8] sm:$0xff]  ;;  %v453_v36 = vld [vmem:[#allocation8 + $0x490] sm:$0xff] }
 0x184   :  { %v432_v51 = vld [vmem:[#allocation8 + $0x3e8] sm:$0xff]  ;;  %v434_v52 = vld [vmem:[#allocation8 + $0x3f8] sm:$0xff]  ;;  %v1888_v56 = vpack.c.bf16 %v837_v50, %v835_v49  ;;  %v459_v50 = vld [vmem:[#allocation8 + $0x4c0] sm:$0xff] }
 0x185   :  { %v1768_v59 = vpack.c.bf16 %v434_v52, %v432_v51  ;;  %v461_v51 = vld [vmem:[#allocation8 + $0x4d0] sm:$0xff]  ;;  %v464_v52 = vld [vmem:[#allocation8 + $0x4e8] sm:$0xff] }
 0x186   :  { %1735 = vmatpush1.bf16.msra.mxu1 %v1734_v3  ;;  %v417_v3 = vld [vmem:[#allocation8 + $0x370] sm:$0xff]  ;;  %1871 = vmatpush1.bf16.msra.mxu0 %v1870_v60  ;;  %v431_v60 = vld [vmem:[#allocation8 + $0x3e0] sm:$0xff] }
 0x187   :  { %1737 = vmatprep.subr.bf16.mxu1 %v1736_v8  ;;  %v1874_v8 = vpack.c.bf16 %v820_v1, %v818_v0  ;;  %v1754_v9 = vpack.c.bf16 %v417_v3, %v415_v62  ;;  %1873 = vmatprep.subr.bf16.mxu0 %v1872_v63  ;;  %v436_v62 = vld [vmem:[#allocation8 + $0x408] sm:$0xff]  ;;  %v438_v63 = vld [vmem:[#allocation8 + $0x418] sm:$0xff]  ;;  %v1890_v0 = vpack.c.bf16 %v836_v58, %v834_v57  ;;  %v435_v3 = vld [vmem:[#allocation8 + $0x400] sm:$0xff] }
 0x188   :  { %v1774_v7 = vpack.c.bf16 %v437_v4, %v435_v3  ;;  %v463_v57 = vld [vmem:[#allocation8 + $0x4e0] sm:$0xff]  ;;  %v465_v58 = vld [vmem:[#allocation8 + $0x4f0] sm:$0xff] }
 0x18a   :  { %1739 = vmatpush1.bf16.msra.mxu1 %v1738_v15  ;;  %v421_v15 = vld [vmem:[#allocation8 + $0x390] sm:$0xff]  ;;  %1875 = vmatpush1.bf16.msra.mxu0 %v1874_v8  ;;  %v1776_v8 = vpack.c.bf16 %v442_v6, %v440_v5  ;;  %v471_v5 = vld [vmem:[#allocation8 + $0x520] sm:$0xff] }
 0x18b   :  { %1741 = vmatprep.subr.bf16.mxu1 %v1740_v20  ;;  %v1878_v20 = vpack.c.bf16 %v824_v13, %v822_v12  ;;  %v1758_v24 = vpack.c.bf16 %v421_v15, %v419_v10  ;;  %1877 = vmatprep.subr.bf16.mxu0 %v1876_v11  ;;  %v441_v10 = vld [vmem:[#allocation8 + $0x430] sm:$0xff]  ;;  %v294_v11 = vrot.slane %v2519_v22, 1  ;;  %v295_v12 = vrot.slane %v2535_v32, 1  ;;  %v444_v13 = vld [vmem:[#allocation8 + $0x448] sm:$0xff] }
 0x18c   :  { %v473_v6 = vld [vmem:[#allocation8 + $0x530] sm:$0xff] }
 0x18d   :  { %v296_v22 = vsel %vm290_vm3, %v294_v11, %v295_v12  ;;  %v475_v11 = vld [vmem:[#allocation8 + $0x540] sm:$0xff] }
 0x18e   :  { %1743 = vmatpush1.bf16.msra.mxu1 %v1742_v33  ;;  %v425_v33 = vld [vmem:[#allocation8 + $0x3b0] sm:$0xff]  ;;  %1879 = vmatpush1.bf16.msra.mxu0 %v1878_v20  ;;  %v448_v20 = vld [vmem:[#allocation8 + $0x468] sm:$0xff] }
 0x18f   :  { %1745 = vmatprep.subr.bf16.mxu1 %v1744_v39  ;;  %v1882_v39 = vpack.c.bf16 %v828_v29, %v826_v27  ;;  %v1762_v41 = vpack.c.bf16 %v425_v33, %v423_v25  ;;  %1881 = vmatprep.subr.bf16.mxu0 %v1880_v26  ;;  %v1782_v25 = vpack.c.bf16 %v445_v18, %v443_v17  ;;  %v447_v27 = vld [vmem:[#allocation8 + $0x460] sm:$0xff]  ;;  %v452_v29 = vld [vmem:[#allocation8 + $0x488] sm:$0xff] }
 0x190   :  { %v1786_v33 = vpack.c.bf16 %v449_v23, %v447_v27  ;;  %v479_v18 = vld [vmem:[#allocation8 + $0x560] sm:$0xff]  ;;  %v485_v23 = vld [vmem:[#allocation8 + $0x590] sm:$0xff] }
 0x191   :  { %v483_v27 = vld [vmem:[#allocation8 + $0x580] sm:$0xff] }
 0x192   :  { %1747 = vmatpush1.bf16.msra.mxu1 %v1746_v47  ;;  %v429_v47 = vld [vmem:[#allocation8 + $0x3d0] sm:$0xff]  ;;  %1883 = vmatpush1.bf16.msra.mxu0 %v1882_v39  ;;  %v458_v39 = vld [vmem:[#allocation8 + $0x4b8] sm:$0xff] }
 0x193   :  { %1749 = vmatprep.subr.bf16.mxu1 %v1748_v54  ;;  %v1886_v54 = vpack.c.bf16 %v832_v45, %v830_v44  ;;  %v1766_v55 = vpack.c.bf16 %v429_v47, %v427_v42  ;;  %1885 = vmatprep.subr.bf16.mxu0 %v1884_v43  ;;  %v1792_v42 = vpack.c.bf16 %v458_v39, %v456_v37  ;;  %v455_v43 = vld [vmem:[#allocation8 + $0x4a0] sm:$0xff]  ;;  %v457_v44 = vld [vmem:[#allocation8 + $0x4b0] sm:$0xff]  ;;  %v460_v45 = vld [vmem:[#allocation8 + $0x4c8] sm:$0xff] }
 0x194   :  { %v1794_v47 = vpack.c.bf16 %v457_v44, %v455_v43  ;;  %v492_v37 = vld [vmem:[#allocation8 + $0x5c8] sm:$0xff]  ;;  %v494_v39 = vld [vmem:[#allocation8 + $0x5d8] sm:$0xff]  ;;  %v491_v43 = vld [vmem:[#allocation8 + $0x5c0] sm:$0xff] }
 0x195   :  { %v493_v44 = vld [vmem:[#allocation8 + $0x5d0] sm:$0xff] }
 0x196   :  { %1751 = vmatpush1.bf16.msra.mxu1 %v1750_v61  ;;  %v433_v61 = vld [vmem:[#allocation8 + $0x3f0] sm:$0xff]  ;;  %1887 = vmatpush1.bf16.msra.mxu0 %v1886_v54  ;;  %v466_v54 = vld [vmem:[#allocation8 + $0x4f8] sm:$0xff] }
 0x197   :  { %1753 = vmatprep.subr.bf16.mxu1 %v1752_v2  ;;  %v1770_v1 = vpack.c.bf16 %v433_v61, %v431_v60  ;;  %1889 = vmatprep.subr.bf16.mxu0 %v1888_v56  ;;  %v1772_v2 = vpack.c.bf16 %v438_v63, %v436_v62  ;;  %v1800_v56 = vpack.c.bf16 %v466_v54, %v464_v52  ;;  %v470_v60 = vld [vmem:[#allocation8 + $0x518] sm:$0xff]  ;;  %v467_v63 = vld [vmem:[#allocation8 + $0x500] sm:$0xff]  ;;  %v292_v54 = vrot.slane %v2552_v53, 1 }
 0x198   :  { %v1802_v61 = vpack.c.bf16 %v465_v58, %v463_v57  ;;  %v302_v57 = vsel %vm290_vm3, %v295_v12, 0.0  ;;  %v843_v12 = vld [vmem:[#allocation10 + $0x1e8] sm:$0xff] }
 0x19a   :  { %1755 = vmatpush1.bf16.msra.mxu1 %v1754_v9  ;;  %1891 = vmatpush1.bf16.msra.mxu0 %v1890_v0  ;;  %v439_v9 = vld [vmem:[#allocation8 + $0x420] sm:$0xff]  ;;  %v469_v0 = vld [vmem:[#allocation8 + $0x510] sm:$0xff] }
 0x19b   :  { %1757 = vmatprep.subr.bf16.mxu1 %v1756_v14  ;;  %v446_v14 = vld [vmem:[#allocation8 + $0x458] sm:$0xff]  ;;  %v1778_v15 = vpack.c.bf16 %v441_v10, %v439_v9  ;;  %v1806_v3 = vpack.c.bf16 %v469_v0, %v467_v63  ;;  %v1810_v9 = vpack.c.bf16 %v473_v6, %v471_v5 }
 0x19c   :  { %v1780_v16 = vpack.c.bf16 %v446_v14, %v444_v13  ;;  %v477_v13 = vld [vmem:[#allocation8 + $0x550] sm:$0xff]  ;;  %v480_v14 = vld [vmem:[#allocation8 + $0x568] sm:$0xff]  ;;  %v845_v63 = vld [vmem:[#allocation10 + $0x1f8] sm:$0xff] }
 0x19d   :  { %v1896_v0 = vpack.c.bf16 %v845_v63, %v843_v12  ;;  %v849_v5 = vld [vmem:[#allocation10 + $0x218] sm:$0xff]  ;;  %v860_v12 = vld [vmem:[#allocation10 + $0x270] sm:$0xff] }
 0x19e   :  { %1759 = vmatpush1.bf16.msra.mxu1 %v1758_v24  ;;  %v450_v24 = vld [vmem:[#allocation8 + $0x478] sm:$0xff] }
 0x19f   :  { %1761 = vmatprep.subr.bf16.mxu1 %v1760_v31  ;;  %v1784_v26 = vpack.c.bf16 %v450_v24, %v448_v20  ;;  %v454_v31 = vld [vmem:[#allocation8 + $0x498] sm:$0xff]  ;;  %v484_v20 = vld [vmem:[#allocation8 + $0x588] sm:$0xff] }
 0x1a0   :  { %v1788_v34 = vpack.c.bf16 %v454_v31, %v452_v29  ;;  %v486_v24 = vld [vmem:[#allocation8 + $0x598] sm:$0xff]  ;;  %v488_v29 = vld [vmem:[#allocation8 + $0x5a8] sm:$0xff] }
 0x1a1   :  { %v490_v31 = vld [vmem:[#allocation8 + $0x5b8] sm:$0xff] }
 0x1a2   :  { %1763 = vmatpush1.bf16.msra.mxu1 %v1762_v41  ;;  %v1790_v41 = vpack.c.bf16 %v453_v36, %v451_v35  ;;  %v487_v35 = vld [vmem:[#allocation8 + $0x5a0] sm:$0xff]  ;;  %v489_v36 = vld [vmem:[#allocation8 + $0x5b0] sm:$0xff] }
 0x1a3   :  { %1765 = vmatprep.subr.bf16.mxu1 %v1764_v46  ;;  %v462_v46 = vld [vmem:[#allocation8 + $0x4d8] sm:$0xff] }
 0x1a4   :  { %v1796_v49 = vpack.c.bf16 %v462_v46, %v460_v45  ;;  %v496_v45 = vld [vmem:[#allocation8 + $0x5e8] sm:$0xff]  ;;  %v498_v46 = vld [vmem:[#allocation8 + $0x5f8] sm:$0xff] }
 0x1a6   :  { %1767 = vmatpush1.bf16.msra.mxu1 %v1766_v55  ;;  %v1798_v55 = vpack.c.bf16 %v461_v51, %v459_v50  ;;  %v495_v50 = vld [vmem:[#allocation8 + $0x5e0] sm:$0xff]  ;;  %v497_v51 = vld [vmem:[#allocation8 + $0x5f0] sm:$0xff] }
 0x1a7   :  { %1769 = vmatprep.subr.bf16.mxu1 %v1768_v59  ;;  %v468_v59 = vld [vmem:[#allocation8 + $0x508] sm:$0xff]  ;;  %v1834_v52 = vpack.c.bf16 %v497_v51, %v495_v50 }
 0x1a8   :  { %v1804_v62 = vpack.c.bf16 %v470_v60, %v468_v59  ;;  %v301_v59 = vsel %vm290_vm3, %v292_v54, 0.0  ;;  %v1892_v60 = vpack.c.bf16 %v841_v38, %v839_v30 }
 0x1aa   :  { %1771 = vmatpush1.bf16.msra.mxu1 %v1770_v1  ;;  %v472_v1 = vld [vmem:[#allocation8 + $0x528] sm:$0xff]  ;;  %1893 = vmatprep.subr.bf16.mxu0 %v1892_v60  ;;  %v1225_v60 = vld [vmem:[#allocation11] sm:$0xff] }
 0x1ab   :  { %1773 = vmatprep.subr.bf16.mxu1 %v1772_v2  ;;  %v474_v2 = vld [vmem:[#allocation8 + $0x538] sm:$0xff] }
 0x1ac   :  { %v1808_v4 = vpack.c.bf16 %v474_v2, %v472_v1  ;;  %v842_v1 = vld [vmem:[#allocation10 + $0x1e0] sm:$0xff]  ;;  %v844_v2 = vld [vmem:[#allocation10 + $0x1f0] sm:$0xff] }
 0x1ad   :  { %653 = vmatmul.mubr.f32.vlgmr.msra.gmra.mrb[0].mxu1 %v2542_v40 }
 0x1ae   :  { %1775 = vmatpush1.bf16.msra.mxu1 %v1774_v7  ;;  %658 = vmatprep.mubr.f32.mxu1 %v2535_v32  ;;  %v476_v7 = vld [vmem:[#allocation8 + $0x548] sm:$0xff]  ;;  %v840_v32 = vld [vmem:[#allocation10 + $0x1d0] sm:$0xff] }
 0x1af   :  { %1777 = vmatprep.subr.bf16.mxu1 %v1776_v8  ;;  %v478_v8 = vld [vmem:[#allocation8 + $0x558] sm:$0xff] }
 0x1b0   :  { %v1812_v10 = vpack.c.bf16 %v478_v8, %v476_v7  ;;  %v2600_v7 = vsub.s32 0, %v2517_v21  ;;  %v499_v8 = vld [vmem:[%s2692_s5] sm:$0x3] }
 0x1b1   :  { %659 = vmatmul.mubr.f32.gmra.mrb[2].mxu1 %v2552_v53 }
 0x1b2   :  { %1779 = vmatpush1.bf16.msra.mxu1 %v1778_v15  ;;  %1562 = vmatprep.mubr.msk.f32.mxu1 %vm2570_vm4, %v296_v22  ;;  %v482_v15 = vld [vmem:[#allocation8 + $0x578] sm:$0xff]  ;;  %v481_v22 = vld [vmem:[#allocation8 + $0x570] sm:$0xff] }
 0x1b3   :  { %1781 = vmatprep.subr.bf16.mxu1 %v1780_v16  ;;  %v1814_v16 = vpack.c.bf16 %v477_v13, %v475_v11  ;;  %v1816_v17 = vpack.c.bf16 %v482_v15, %v480_v14 }
 0x1b6   :  { %1783 = vmatpush1.bf16.msra.mxu1 %v1782_v25  ;;  %v1818_v25 = vpack.c.bf16 %v481_v22, %v479_v18 }
 0x1b7   :  { %1785 = vmatprep.subr.bf16.mxu1 %v1784_v26  ;;  %v1820_v26 = vpack.c.bf16 %v486_v24, %v484_v20  ;;  %v846_v20 = vld [vmem:[#allocation10 + $0x200] sm:$0xff]  ;;  %v848_v24 = vld [vmem:[#allocation10 + $0x210] sm:$0xff] }
 0x1ba   :  { %1787 = vmatpush1.bf16.msra.mxu1 %v1786_v33  ;;  %v1822_v33 = vpack.c.bf16 %v485_v23, %v483_v27  ;;  %v851_v23 = vld [vmem:[#allocation10 + $0x228] sm:$0xff] }
 0x1bb   :  { %1789 = vmatprep.subr.bf16.mxu1 %v1788_v34  ;;  %v1824_v34 = vpack.c.bf16 %v490_v31, %v488_v29  ;;  %v853_v29 = vld [vmem:[#allocation10 + $0x238] sm:$0xff] }
 0x1be   :  { %1791 = vmatpush1.bf16.msra.mxu1 %v1790_v41  ;;  %v1826_v41 = vpack.c.bf16 %v489_v36, %v487_v35  ;;  %v1902_v35 = vpack.c.bf16 %v848_v24, %v846_v20  ;;  %v867_v20 = vld [vmem:[#allocation10 + $0x2a8] sm:$0xff]  ;;  %v869_v24 = vld [vmem:[#allocation10 + $0x2b8] sm:$0xff] }
 0x1bf   :  { %1793 = vmatprep.subr.bf16.mxu1 %v1792_v42  ;;  %v1828_v42 = vpack.c.bf16 %v494_v39, %v492_v37  ;;  %v1904_v39 = vpack.c.bf16 %v853_v29, %v851_v23  ;;  %v1254_v23 = vld [vmem:[#allocation11 + $0xe8] sm:$0xff] }
 0x1c2   :  { %1795 = vmatpush1.bf16.msra.mxu1 %v1794_v47  ;;  %v1830_v47 = vpack.c.bf16 %v493_v44, %v491_v43 }
 0x1c3   :  { %1797 = vmatprep.subr.bf16.mxu1 %v1796_v49  ;;  %v1832_v49 = vpack.c.bf16 %v498_v46, %v496_v45  ;;  %v855_v45 = vld [vmem:[#allocation10 + $0x248] sm:$0xff]  ;;  %v857_v46 = vld [vmem:[#allocation10 + $0x258] sm:$0xff] }
 0x1c4   :  { %v1908_v51 = vpack.c.bf16 %v857_v46, %v855_v45  ;;  %v1262_v45 = vld [vmem:[#allocation11 + $0x128] sm:$0xff] }
 0x1c6   :  { %1799 = vmatpush1.bf16.msra.mxu1 %v1798_v55  ;;  %v291_v55 = vrot.slane %v2542_v40, 1 }
 0x1c7   :  { %1801 = vmatprep.subr.bf16.mxu1 %v1800_v56 }
 0x1c8   :  { %v293_v58 = vsel %vm290_vm3, %v291_v55, %v292_v54  ;;  %v856_v54 = vld [vmem:[#allocation10 + $0x250] sm:$0xff] }
 0x1ca   :  { %1803 = vmatpush1.bf16.msra.mxu1 %v1802_v61  ;;  %v838_v61 = vld [vmem:[#allocation10 + $0x1c0] sm:$0xff] }
 0x1cb   :  { %1805 = vmatprep.subr.bf16.mxu1 %v1804_v62  ;;  %v1894_v62 = vpack.c.bf16 %v840_v32, %v838_v61  ;;  %v1229_v61 = vld [vmem:[#allocation11 + $0x20] sm:$0xff] }
 0x1cc   :  { %v2030_v63 = vpack.c.bf16 %v1229_v61, %v1225_v60  ;;  %v874_v60 = vld [vmem:[#allocation10 + $0x2e0] sm:$0xff] }
 0x1cd   :  { %1895 = vmatpush1.bf16.msra.mxu0 %v1894_v62  ;;  %v858_v62 = vld [vmem:[#allocation10 + $0x260] sm:$0xff] }
 0x1ce   :  { %1807 = vmatpush1.bf16.msra.mxu1 %v1806_v3  ;;  %v1898_v3 = vpack.c.bf16 %v844_v2, %v842_v1  ;;  %1897 = vmatprep.subr.bf16.mxu0 %v1896_v0  ;;  %v1234_v0 = vld [vmem:[#allocation11 + $0x48] sm:$0xff]  ;;  %v865_v2 = vld [vmem:[#allocation10 + $0x298] sm:$0xff] }
 0x1cf   :  { %1809 = vmatprep.subr.bf16.mxu1 %v1808_v4  ;;  %v847_v4 = vld [vmem:[#allocation10 + $0x208] sm:$0xff] }
 0x1d0   :  { %v1900_v6 = vpack.c.bf16 %v849_v5, %v847_v4  ;;  %v863_v1 = vld [vmem:[#allocation10 + $0x288] sm:$0xff]  ;;  %v1233_v4 = vld [vmem:[#allocation11 + $0x40] sm:$0xff] }
 0x1d1   :  { %1899 = vmatpush1.bf16.msra.mxu0 %v1898_v3  ;;  %v2032_v3 = vpack.c.bf16 %v1238_v48, %v1234_v0  ;;  %v1237_v5 = vld [vmem:[#allocation11 + $0x60] sm:$0xff]  ;;  %v1274_v0 = vld [vmem:[#allocation11 + $0x188] sm:$0xff]  ;;  %v881_v48 = vld [vmem:[#allocation10 + $0x318] sm:$0xff] }
 0x1d2   :  { %1811 = vmatpush1.bf16.msra.mxu1 %v1810_v9  ;;  %1901 = vmatprep.subr.bf16.mxu0 %v1900_v6  ;;  %v2606_v9 = vsub.s32 1, %v2517_v21  ;;  %v1914_v6 = vpack.c.bf16 %v860_v12, %v858_v62  ;;  %v1269_v62 = vld [vmem:[#allocation11 + $0x160] sm:$0xff] }
 0x1d3   :  { %1813 = vmatprep.subr.bf16.mxu1 %v1812_v10  ;;  %v504_v10 = vrot.slane %v499_v8, %v2600_v7 }
 0x1d4   :  { %v508_v11 = vrot.slane %v499_v8, %v2606_v9  ;;  %v2034_v8 = vpack.c.bf16 %v1237_v5, %v1233_v4  ;;  %v878_v5 = vld [vmem:[#allocation10 + $0x300] sm:$0xff] }
 0x1d6   :  { %1815 = vmatpush1.bf16.msra.mxu1 %v1814_v16 }
 0x1d7   :  { %1817 = vmatprep.subr.bf16.mxu1 %v1816_v17 }
 0x1da   :  { %1819 = vmatpush1.bf16.msra.mxu1 %v1818_v25 }
 0x1db   :  { %1821 = vmatprep.subr.bf16.mxu1 %v1820_v26 }
 0x1de   :  { %1823 = vmatpush1.bf16.msra.mxu1 %v1822_v33 }
 0x1df   :  { %1825 = vmatprep.subr.bf16.mxu1 %v1824_v34 }
 0x1e2   :  { %1827 = vmatpush1.bf16.msra.mxu1 %v1826_v41  ;;  %v850_v41 = vld [vmem:[#allocation10 + $0x220] sm:$0xff] }
 0x1e3   :  { %1829 = vmatprep.subr.bf16.mxu1 %v1828_v42  ;;  %v852_v42 = vld [vmem:[#allocation10 + $0x230] sm:$0xff] }
 0x1e6   :  { %1831 = vmatpush1.bf16.msra.mxu1 %v1830_v47 }
 0x1e7   :  { %1833 = vmatprep.subr.bf16.mxu1 %v1832_v49  ;;  %v1906_v49 = vpack.c.bf16 %v852_v42, %v850_v41  ;;  %v868_v41 = vld [vmem:[#allocation10 + $0x2b0] sm:$0xff]  ;;  %v1258_v42 = vld [vmem:[#allocation11 + $0x108] sm:$0xff] }
 0x1ea   :  { %1835 = vmatpush1.bf16.msra.mxu1 %v1834_v52  ;;  %v854_v52 = vld [vmem:[#allocation10 + $0x240] sm:$0xff] }
 0x1eb   :  { %v1910_v30 = vpack.c.bf16 %v856_v54, %v854_v52  ;;  %v1261_v52 = vld [vmem:[#allocation11 + $0x120] sm:$0xff] }
 0x1ed   :  { %1563 = vmatmul.mubr.msk.f32.vlgmr.msra.gmra.mrb[0].mxu1 %vm2570_vm4, %v293_v58  ;;  %v861_v58 = vld [vmem:[#allocation10 + $0x278] sm:$0xff] }
 0x1ee   :  { %1564 = vmatprep.mubr.msk.f32.mxu1 %vm2584_vm5, %v302_v57  ;;  %v859_v57 = vld [vmem:[#allocation10 + $0x268] sm:$0xff] }
 0x1ef   :  { %v1912_v32 = vpack.c.bf16 %v861_v58, %v859_v57  ;;  %v1266_v57 = vld [vmem:[#allocation11 + $0x148] sm:$0xff] }
 0x1f0   :  { %v1270_v58 = vld [vmem:[#allocation11 + $0x168] sm:$0xff] }
 0x1f1   :  { %1565 = vmatmul.mubr.msk.f32.gmra.mrb[2].mxu1 %vm2584_vm5, %v301_v59  ;;  %v1230_v59 = vld [vmem:[#allocation11 + $0x28] sm:$0xff]  ;;  %v2048_v61 = vpack.c.bf16 %v1270_v58, %v1266_v57  ;;  %v890_v58 = vld [vmem:[#allocation10 + $0x360] sm:$0xff] }
 0x1f2   :  { %v2028_v38 = vpack.c.bf16 %v1230_v59, %v1226_v28  ;;  %v875_v28 = vld [vmem:[#allocation10 + $0x2e8] sm:$0xff]  ;;  %v877_v59 = vld [vmem:[#allocation10 + $0x2f8] sm:$0xff] }
 0x1f3   :  { %v1928_v12 = vpack.c.bf16 %v877_v59, %v875_v28  ;;  %v1297_v59 = vld [vmem:[#allocation11 + $0x240] sm:$0xff] }
 0x1f4   :  { %2029 = vmatprep.subr.bf16.mxu1 %v2028_v38 }
 0x1f5   :  { %2031 = vmatpush1.bf16.msra.mxu1 %v2030_v63  ;;  %v876_v63 = vld [vmem:[#allocation10 + $0x2f0] sm:$0xff] }
 0x1f6   :  { %2033 = vmatprep.subr.bf16.mxu1 %v2032_v3  ;;  %v1930_v4 = vpack.c.bf16 %v876_v63, %v874_v60  ;;  %v892_v60 = vld [vmem:[#allocation10 + $0x370] sm:$0xff] }
 0x1f9   :  { %2035 = vmatpush1.bf16.msra.mxu1 %v2034_v8  ;;  %v1273_v8 = vld [vmem:[#allocation11 + $0x180] sm:$0xff] }
 0x2c0   :  { %v731_v13 = vpop.f32.mrb[0].mxu1 }
 0x2c1   :  { %v2156_v14 = vadd.f32 %v731_v13, %v504_v10  ;;  %v733_v15 = vpop.f32.mrb[1].mxu1  ;;  %v1916_v13 = vpack.c.bf16 %v865_v2, %v863_v1  ;;  %v1278_v1 = vld [vmem:[#allocation11 + $0x1a8] sm:$0xff] }
 0x2c2   :  { %v2157_v16 = vadd.f32 %v733_v15, %v508_v11  ;;  %v864_v15 = vld [vmem:[#allocation10 + $0x290] sm:$0xff]  ;;  %v879_v2 = vld [vmem:[#allocation10 + $0x308] sm:$0xff] }
 0x2c3   :  { %v2610_v17 = vmax.f32 %v2156_v14, 0.0  ;;  %v862_v14 = vld [vmem:[#allocation10 + $0x280] sm:$0xff] }
 0x2c4   :  { %v2612_v18 = vmax.f32 %v2157_v16, 0.0  ;;  %v737_v22 = vpop.f32.mrb[2].mxu1  ;;  %v1918_v29 = vpack.c.bf16 %v864_v15, %v862_v14  ;;  %v1282_v14 = vld [vmem:[#allocation11 + $0x1c8] sm:$0xff] }
 0x2c5   :  { %v750_v25 = vrot.slane %v2610_v17, 7  ;;  %v2158_v26 = vadd.f32 %v737_v22, %v504_v10  ;;  %v739_v27 = vpop.f32.mrb[3].mxu1  ;;  %v1242_v10 = vld [vmem:[#allocation11 + $0x88] sm:$0xff]  ;;  %v1241_v22 = vld [vmem:[#allocation11 + $0x80] sm:$0xff] }
 0x2c6   :  { %v2159_v31 = vadd.f32 %v739_v27, %v508_v11  ;;  %v751_v33 = vrot.slane %v2612_v18, 7  ;;  %v1246_v11 = vld [vmem:[#allocation11 + $0xa8] sm:$0xff] }
 0x2c7   :  { %v2616_v34 = vmax.f32 %v2158_v26, 0.0  ;;  %v760_v43 = vsel %vm273_vm0, 0.0, %v750_v25  ;;  %v2036_v16 = vpack.c.bf16 %v1246_v11, %v1242_v10  ;;  %v1250_v27 = vld [vmem:[#allocation11 + $0xc8] sm:$0xff]  ;;  %v1277_v10 = vld [vmem:[#allocation11 + $0x1a0] sm:$0xff]  ;;  %v1932_v11 = vpack.c.bf16 %v881_v48, %v879_v2 }
 0x2c8   :  { %v2618_v36 = vmax.f32 %v2159_v31, 0.0  ;;  %v761_v37 = vsel %vm273_vm0, 0.0, %v751_v33  ;;  %v2040_v31 = vpack.c.bf16 %v1254_v23, %v1250_v27  ;;  %v1286_v15 = vld [vmem:[#allocation11 + $0x1e8] sm:$0xff]  ;;  %v1281_v27 = vld [vmem:[#allocation11 + $0x1c0] sm:$0xff] }
 0x2c9   :  { %v752_v44 = vrot.slane %v2616_v34, 7  ;;  %1566 = vmatprep.mubr.msk.f32.mxu0 %vm2525_vm1, %v761_v37  ;;  %2037 = vmatprep.subr.bf16.mxu1 %v2036_v16  ;;  %v1920_v37 = vpack.c.bf16 %v869_v24, %v867_v20  ;;  %v883_v16 = vld [vmem:[#allocation10 + $0x328] sm:$0xff]  ;;  %v2054_v20 = vpack.c.bf16 %v1277_v10, %v1273_v8  ;;  %v1285_v23 = vld [vmem:[#allocation11 + $0x1e0] sm:$0xff] }
 0x2ca   :  { %v754_v47 = vrot.slane %v2618_v36, 7  ;;  %1567 = vmatmul.mubr.msk.f32.vlgmr.msra.gmra.mrb[4].mxu0 %vm2525_vm1, %v760_v43  ;;  %v871_v43 = vld [vmem:[#allocation10 + $0x2c8] sm:$0xff]  ;;  %v1305_v48 = vld [vmem:[#allocation11 + $0x280] sm:$0xff] }
 0x2cb   :  { %1903 = vmatpush1.bf16.msra.mxu0 %v1902_v35  ;;  %v753_v55 = vsel %vm273_vm0, %v750_v25, %v752_v44  ;;  %v1245_v25 = vld [vmem:[#allocation11 + $0xa0] sm:$0xff]  ;;  %v873_v44 = vld [vmem:[#allocation10 + $0x2d8] sm:$0xff]  ;;  %v1318_v8 = vld [vmem:[#allocation11 + $0x2e8] sm:$0xff] }
 0x2cc   :  { %v755_v50 = vsel %vm273_vm0, %v751_v33, %v754_v47  ;;  %1905 = vmatprep.subr.bf16.mxu0 %v1904_v39  ;;  %v2038_v26 = vpack.c.bf16 %v1245_v25, %v1241_v22  ;;  %v1249_v33 = vld [vmem:[#allocation11 + $0xc0] sm:$0xff]  ;;  %v1924_v54 = vpack.c.bf16 %v873_v44, %v871_v43  ;;  %v885_v22 = vld [vmem:[#allocation10 + $0x338] sm:$0xff]  ;;  %v899_v10 = vld [vmem:[#allocation10 + $0x3a8] sm:$0xff] }
 0x2cd   :  { %1568 = vmatprep.mubr.msk.f32.mxu0 %vm2547_vm2, %v755_v50  ;;  %v1253_v35 = vld [vmem:[#allocation11 + $0xe0] sm:$0xff]  ;;  %v2044_v50 = vpack.c.bf16 %v1262_v45, %v1258_v42 }
 0x2ce   :  { %1569 = vmatmul.mubr.msk.f32.gmra.mrb[6].mxu0 %vm2547_vm2, %v753_v55  ;;  %v866_v39 = vld [vmem:[#allocation10 + $0x2a0] sm:$0xff]  ;;  %2039 = vmatpush1.bf16.msra.mxu1 %v2038_v26  ;;  %v2042_v46 = vpack.c.bf16 %v1253_v35, %v1249_v33  ;;  %v872_v55 = vld [vmem:[#allocation10 + $0x2d0] sm:$0xff]  ;;  %v2056_v26 = vpack.c.bf16 %v1286_v15, %v1282_v14  ;;  %v1290_v33 = vld [vmem:[#allocation11 + $0x208] sm:$0xff] }
 0x2cf   :  { %1907 = vmatpush1.bf16.msra.mxu0 %v1906_v49  ;;  %1127 = vmatprep.mubr.f32.mxu0 %v2612_v18  ;;  %v1922_v47 = vpack.c.bf16 %v868_v41, %v866_v39  ;;  %v870_v49 = vld [vmem:[#allocation10 + $0x2c0] sm:$0xff]  ;;  %v1294_v35 = vld [vmem:[#allocation11 + $0x228] sm:$0xff]  ;;  %v889_v39 = vld [vmem:[#allocation10 + $0x358] sm:$0xff]  ;;  %v2058_v41 = vpack.c.bf16 %v1285_v23, %v1281_v27 }
 0x2d0   :  { %1909 = vmatprep.subr.bf16.mxu0 %v1908_v51  ;;  %2041 = vmatprep.subr.bf16.mxu1 %v2040_v31  ;;  %v1257_v51 = vld [vmem:[#allocation11 + $0x100] sm:$0xff]  ;;  %v1926_v38 = vpack.c.bf16 %v872_v55, %v870_v49  ;;  %v884_v31 = vld [vmem:[#allocation10 + $0x330] sm:$0xff]  ;;  %v2060_v44 = vpack.c.bf16 %v1294_v35, %v1290_v33  ;;  %v1326_v27 = vld [vmem:[#allocation11 + $0x328] sm:$0xff] }
 0x2d1   :  { %v882_v25 = vld [vmem:[#allocation10 + $0x320] sm:$0xff]  ;;  %v888_v49 = vld [vmem:[#allocation10 + $0x350] sm:$0xff]  ;;  %v903_v23 = vld [vmem:[#allocation10 + $0x3c8] sm:$0xff] }
 0x2d2   :  { %2043 = vmatpush1.bf16.msra.mxu1 %v2042_v46  ;;  %v1938_v42 = vpack.c.bf16 %v884_v31, %v882_v25  ;;  %v886_v43 = vld [vmem:[#allocation10 + $0x340] sm:$0xff]  ;;  %v900_v25 = vld [vmem:[#allocation10 + $0x3b0] sm:$0xff] }
 0x2d3   :  { %1911 = vmatpush1.bf16.msra.mxu0 %v1910_v30  ;;  %v2046_v30 = vpack.c.bf16 %v1261_v52, %v1257_v51  ;;  %2045 = vmatprep.subr.bf16.mxu1 %v2044_v50  ;;  %v1289_v45 = vld [vmem:[#allocation11 + $0x200] sm:$0xff]  ;;  %v1298_v50 = vld [vmem:[#allocation11 + $0x248] sm:$0xff]  ;;  %v1942_v57 = vpack.c.bf16 %v888_v49, %v886_v43  ;;  %v904_v43 = vld [vmem:[#allocation10 + $0x3d0] sm:$0xff] }
 0x2d4   :  { %1913 = vmatprep.subr.bf16.mxu0 %v1912_v32  ;;  %v1265_v32 = vld [vmem:[#allocation11 + $0x140] sm:$0xff]  ;;  %v1302_v51 = vld [vmem:[#allocation11 + $0x268] sm:$0xff] }
 0x2d5   :  { %v2050_v3 = vpack.c.bf16 %v1269_v62, %v1265_v32  ;;  %v1293_v46 = vld [vmem:[#allocation11 + $0x220] sm:$0xff]  ;;  %v891_v52 = vld [vmem:[#allocation10 + $0x368] sm:$0xff]  ;;  %v2064_v28 = vpack.c.bf16 %v1302_v51, %v1298_v50 }
 0x2d6   :  { %2047 = vmatpush1.bf16.msra.mxu1 %v2046_v30  ;;  %v2062_v55 = vpack.c.bf16 %v1293_v46, %v1289_v45  ;;  %v1301_v30 = vld [vmem:[#allocation11 + $0x260] sm:$0xff]  ;;  %v1310_v32 = vld [vmem:[#allocation11 + $0x2a8] sm:$0xff] }
 0x2d7   :  { %1915 = vmatpush1.bf16.msra.mxu0 %v1914_v6  ;;  %2049 = vmatprep.subr.bf16.mxu1 %v2048_v61  ;;  %v2052_v6 = vpack.c.bf16 %v1278_v1, %v1274_v0  ;;  %v1306_v61 = vld [vmem:[#allocation11 + $0x288] sm:$0xff]  ;;  %v2066_v63 = vpack.c.bf16 %v1301_v30, %v1297_v59  ;;  %v1946_v0 = vpack.c.bf16 %v892_v60, %v890_v58  ;;  %v894_v1 = vld [vmem:[#allocation10 + $0x380] sm:$0xff]  ;;  %v908_v58 = vld [vmem:[#allocation10 + $0x3f0] sm:$0xff] }
 0x2d8   :  { %1917 = vmatprep.subr.bf16.mxu0 %v1916_v13  ;;  %v880_v13 = vld [vmem:[#allocation10 + $0x310] sm:$0xff]  ;;  %v895_v62 = vld [vmem:[#allocation10 + $0x388] sm:$0xff]  ;;  %v2068_v2 = vpack.c.bf16 %v1310_v32, %v1306_v61  ;;  %v898_v15 = vld [vmem:[#allocation10 + $0x3a0] sm:$0xff] }
 0x2d9   :  { %v1934_v24 = vpack.c.bf16 %v880_v13, %v878_v5  ;;  %v896_v5 = vld [vmem:[#allocation10 + $0x390] sm:$0xff]  ;;  %v1954_v33 = vpack.c.bf16 %v900_v25, %v898_v15  ;;  %v902_v35 = vld [vmem:[#allocation10 + $0x3c0] sm:$0xff]  ;;  %v1334_v45 = vld [vmem:[#allocation11 + $0x368] sm:$0xff] }
 0x2da   :  { %2051 = vmatpush1.bf16.msra.mxu1 %v2050_v3  ;;  %v1309_v3 = vld [vmem:[#allocation11 + $0x2a0] sm:$0xff]  ;;  %v1950_v14 = vpack.c.bf16 %v896_v5, %v894_v1  ;;  %v907_v46 = vld [vmem:[#allocation10 + $0x3e8] sm:$0xff]  ;;  %v1958_v50 = vpack.c.bf16 %v904_v43, %v902_v35  ;;  %v913_v59 = vld [vmem:[#allocation10 + $0x418] sm:$0xff] }
 0x2db   :  { %1919 = vmatpush1.bf16.msra.mxu0 %v1918_v29  ;;  %2053 = vmatprep.subr.bf16.mxu1 %v2052_v6  ;;  %v1936_v29 = vpack.c.bf16 %v885_v22, %v883_v16  ;;  %v1314_v6 = vld [vmem:[#allocation11 + $0x2c8] sm:$0xff]  ;;  %v2070_v13 = vpack.c.bf16 %v1309_v3, %v1305_v48  ;;  %v1313_v22 = vld [vmem:[#allocation11 + $0x2c0] sm:$0xff]  ;;  %v912_v32 = vld [vmem:[#allocation10 + $0x410] sm:$0xff] }
 0x2dc   :  { %1921 = vmatprep.subr.bf16.mxu0 %v1920_v37  ;;  %v887_v37 = vld [vmem:[#allocation10 + $0x348] sm:$0xff]  ;;  %v2072_v16 = vpack.c.bf16 %v1318_v8, %v1314_v6  ;;  %v910_v61 = vld [vmem:[#allocation10 + $0x400] sm:$0xff]  ;;  %v921_v3 = vld [vmem:[#allocation10 + $0x458] sm:$0xff]  ;;  %v769_v6 = vrot.slane %v2612_v18, 1 }
 0x2dd   :  { %v914_v1 = vld [vmem:[#allocation10 + $0x420] sm:$0xff]  ;;  %v919_v48 = vld [vmem:[#allocation10 + $0x448] sm:$0xff]  ;;  %v929_v25 = vld [vmem:[#allocation10 + $0x498] sm:$0xff] }
 0x2de   :  { %2055 = vmatpush1.bf16.msra.mxu1 %v2054_v20  ;;  %v1317_v20 = vld [vmem:[#allocation11 + $0x2e0] sm:$0xff]  ;;  %v1972_v8 = vpack.c.bf16 %v921_v3, %v919_v48  ;;  %v937_v43 = vld [vmem:[#allocation10 + $0x4d8] sm:$0xff] }
 0x2df   :  { %1923 = vmatpush1.bf16.msra.mxu0 %v1922_v47  ;;  %2057 = vmatprep.subr.bf16.mxu1 %v2056_v26  ;;  %v1940_v47 = vpack.c.bf16 %v889_v39, %v887_v37  ;;  %v1322_v26 = vld [vmem:[#allocation11 + $0x308] sm:$0xff]  ;;  %v2074_v31 = vpack.c.bf16 %v1317_v20, %v1313_v22  ;;  %v1321_v39 = vld [vmem:[#allocation11 + $0x300] sm:$0xff]  ;;  %v924_v20 = vld [vmem:[#allocation10 + $0x470] sm:$0xff] }
 0x2e0   :  { %1925 = vmatprep.subr.bf16.mxu0 %v1924_v54  ;;  %v893_v54 = vld [vmem:[#allocation10 + $0x378] sm:$0xff]  ;;  %v2076_v37 = vpack.c.bf16 %v1326_v27, %v1322_v26  ;;  %v922_v18 = vld [vmem:[#allocation10 + $0x460] sm:$0xff] }
 0x2e1   :  { %v1978_v26 = vpack.c.bf16 %v924_v20, %v922_v18  ;;  %v950_v3 = vld [vmem:[#allocation10 + $0x540] sm:$0xff] }
 0x2e2   :  { %2059 = vmatpush1.bf16.msra.mxu1 %v2058_v41  ;;  %v1325_v41 = vld [vmem:[#allocation11 + $0x320] sm:$0xff] }
 0x2e3   :  { %1927 = vmatpush1.bf16.msra.mxu0 %v1926_v38  ;;  %2061 = vmatprep.subr.bf16.mxu1 %v2060_v44  ;;  %v1944_v38 = vpack.c.bf16 %v893_v54, %v891_v52  ;;  %v1330_v44 = vld [vmem:[#allocation11 + $0x348] sm:$0xff]  ;;  %v2078_v49 = vpack.c.bf16 %v1325_v41, %v1321_v39  ;;  %v1329_v52 = vld [vmem:[#allocation11 + $0x340] sm:$0xff]  ;;  %v932_v41 = vld [vmem:[#allocation10 + $0x4b0] sm:$0xff] }
 0x2e4   :  { %1929 = vmatprep.subr.bf16.mxu0 %v1928_v12  ;;  %v897_v12 = vld [vmem:[#allocation10 + $0x398] sm:$0xff]  ;;  %v2080_v51 = vpack.c.bf16 %v1334_v45, %v1330_v44  ;;  %v1333_v54 = vld [vmem:[#allocation11 + $0x360] sm:$0xff] }
 0x2e5   :  { %v2082_v30 = vpack.c.bf16 %v1333_v54, %v1329_v52  ;;  %v930_v39 = vld [vmem:[#allocation10 + $0x4a0] sm:$0xff] }
 0x2e6   :  { %2063 = vmatpush1.bf16.msra.mxu1 %v2062_v55  ;;  %v1986_v44 = vpack.c.bf16 %v932_v41, %v930_v39  ;;  %v938_v54 = vld [vmem:[#allocation10 + $0x4e0] sm:$0xff] }
 0x2e7   :  { %1931 = vmatpush1.bf16.msra.mxu0 %v1930_v4  ;;  %2065 = vmatprep.subr.bf16.mxu1 %v2064_v28  ;;  %v1948_v4 = vpack.c.bf16 %v897_v12, %v895_v62  ;;  %v911_v28 = vld [vmem:[#allocation10 + $0x408] sm:$0xff]  ;;  %v917_v12 = vld [vmem:[#allocation10 + $0x438] sm:$0xff]  ;;  %v958_v20 = vld [vmem:[#allocation10 + $0x580] sm:$0xff] }
 0x2e8   :  { %1933 = vmatprep.subr.bf16.mxu0 %v1932_v11  ;;  %v901_v11 = vld [vmem:[#allocation10 + $0x3b8] sm:$0xff]  ;;  %v1964_v60 = vpack.c.bf16 %v913_v59, %v911_v28  ;;  %v915_v62 = vld [vmem:[#allocation10 + $0x428] sm:$0xff]  ;;  %v966_v41 = vld [vmem:[#allocation10 + $0x5c0] sm:$0xff] }
 0x2ea   :  { %2067 = vmatpush1.bf16.msra.mxu1 %v2066_v63  ;;  %v1966_v63 = vpack.c.bf16 %v912_v32, %v910_v61  ;;  %v949_v61 = vld [vmem:[#allocation10 + $0x538] sm:$0xff] }
 0x2eb   :  { %1935 = vmatpush1.bf16.msra.mxu0 %v1934_v24  ;;  %2069 = vmatprep.subr.bf16.mxu1 %v2068_v2  ;;  %v1952_v24 = vpack.c.bf16 %v901_v11, %v899_v10  ;;  %v916_v2 = vld [vmem:[#allocation10 + $0x430] sm:$0xff]  ;;  %v918_v10 = vld [vmem:[#allocation10 + $0x440] sm:$0xff] }
 0x2ec   :  { %1937 = vmatprep.subr.bf16.mxu0 %v1936_v29  ;;  %v905_v29 = vld [vmem:[#allocation10 + $0x3d8] sm:$0xff]  ;;  %v1970_v5 = vpack.c.bf16 %v916_v2, %v914_v1  ;;  %v920_v11 = vld [vmem:[#allocation10 + $0x450] sm:$0xff] }
 0x2ed   :  { %v953_v1 = vld [vmem:[#allocation10 + $0x558] sm:$0xff] }
 0x2ee   :  { %2071 = vmatpush1.bf16.msra.mxu1 %v2070_v13  ;;  %v923_v13 = vld [vmem:[#allocation10 + $0x468] sm:$0xff] }
 0x2ef   :  { %1939 = vmatpush1.bf16.msra.mxu0 %v1938_v42  ;;  %2073 = vmatprep.subr.bf16.mxu1 %v2072_v16  ;;  %v1956_v42 = vpack.c.bf16 %v905_v29, %v903_v23  ;;  %v1974_v16 = vpack.c.bf16 %v920_v11, %v918_v10  ;;  %v926_v23 = vld [vmem:[#allocation10 + $0x480] sm:$0xff]  ;;  %v928_v29 = vld [vmem:[#allocation10 + $0x490] sm:$0xff] }
 0x2f0   :  { %1941 = vmatprep.subr.bf16.mxu0 %v1940_v47  ;;  %v909_v47 = vld [vmem:[#allocation10 + $0x3f8] sm:$0xff]  ;;  %v1982_v35 = vpack.c.bf16 %v928_v29, %v926_v23  ;;  %v962_v29 = vld [vmem:[#allocation10 + $0x5a0] sm:$0xff] }
 0x2f1   :  { %v1960_v55 = vpack.c.bf16 %v909_v47, %v907_v46  ;;  %v934_v46 = vld [vmem:[#allocation10 + $0x4c0] sm:$0xff]  ;;  %v936_v47 = vld [vmem:[#allocation10 + $0x4d0] sm:$0xff] }
 0x2f2   :  { %2075 = vmatpush1.bf16.msra.mxu1 %v2074_v31  ;;  %v931_v31 = vld [vmem:[#allocation10 + $0x4a8] sm:$0xff] }
 0x2f3   :  { %1943 = vmatpush1.bf16.msra.mxu0 %v1942_v57  ;;  %2077 = vmatprep.subr.bf16.mxu1 %v2076_v37  ;;  %v906_v57 = vld [vmem:[#allocation10 + $0x3e0] sm:$0xff] }
 0x2f4   :  { %1945 = vmatprep.subr.bf16.mxu0 %v1944_v38  ;;  %v1962_v38 = vpack.c.bf16 %v908_v58, %v906_v57  ;;  %v943_v57 = vld [vmem:[#allocation10 + $0x508] sm:$0xff]  ;;  %v945_v58 = vld [vmem:[#allocation10 + $0x518] sm:$0xff] }
 0x2f5   :  { %v1996_v59 = vpack.c.bf16 %v945_v58, %v943_v57  ;;  %v1231_v57 = vld [vmem:[#allocation11 + $0x30] sm:$0xff]  ;;  %v767_v58 = vrot.slane %v2616_v34, 1 }
 0x2f6   :  { %2079 = vmatpush1.bf16.msra.mxu1 %v2078_v49  ;;  %v939_v49 = vld [vmem:[#allocation10 + $0x4e8] sm:$0xff] }
 0x2f7   :  { %1947 = vmatpush1.bf16.msra.mxu0 %v1946_v0  ;;  %2081 = vmatprep.subr.bf16.mxu1 %v2080_v51  ;;  %v1968_v0 = vpack.c.bf16 %v917_v12, %v915_v62  ;;  %v1990_v51 = vpack.c.bf16 %v936_v47, %v934_v46  ;;  %v946_v12 = vld [vmem:[#allocation10 + $0x520] sm:$0xff] }
 0x2f8   :  { %1949 = vmatprep.subr.bf16.mxu0 %v1948_v4  ;;  %v770_v4 = vrot.slane %v2618_v36, 1  ;;  %v970_v47 = vld [vmem:[#allocation10 + $0x5e0] sm:$0xff] }
 0x2fa   :  { %2083 = vmatpush1.bf16.msra.mxu1 %v2082_v30  ;;  %v771_v15 = vsel %vm290_vm3, %v769_v6, %v770_v4  ;;  %v942_v30 = vld [vmem:[#allocation10 + $0x500] sm:$0xff]  ;;  %v955_v6 = vld [vmem:[#allocation10 + $0x568] sm:$0xff] }
 0x2fb   :  { %1951 = vmatpush1.bf16.msra.mxu0 %v1950_v14  ;;  %v925_v14 = vld [vmem:[#allocation10 + $0x478] sm:$0xff] }
 0x2fc   :  { %1953 = vmatprep.subr.bf16.mxu0 %v1952_v24  ;;  %v1976_v22 = vpack.c.bf16 %v925_v14, %v923_v13  ;;  %v927_v24 = vld [vmem:[#allocation10 + $0x488] sm:$0xff]  ;;  %v954_v13 = vld [vmem:[#allocation10 + $0x560] sm:$0xff]  ;;  %v956_v14 = vld [vmem:[#allocation10 + $0x570] sm:$0xff] }
 0x2fd   :  { %v1980_v27 = vpack.c.bf16 %v929_v25, %v927_v24  ;;  %v960_v24 = vld [vmem:[#allocation10 + $0x590] sm:$0xff]  ;;  %v963_v25 = vld [vmem:[#allocation10 + $0x5a8] sm:$0xff] }
 0x2ff   :  { %1955 = vmatpush1.bf16.msra.mxu0 %v1954_v33  ;;  %v933_v33 = vld [vmem:[#allocation10 + $0x4b8] sm:$0xff] }
 0x300   :  { %1957 = vmatprep.subr.bf16.mxu0 %v1956_v42  ;;  %v1984_v37 = vpack.c.bf16 %v933_v33, %v931_v31  ;;  %v935_v42 = vld [vmem:[#allocation10 + $0x4c8] sm:$0xff]  ;;  %v964_v31 = vld [vmem:[#allocation10 + $0x5b0] sm:$0xff] }
 0x301   :  { %v1988_v45 = vpack.c.bf16 %v937_v43, %v935_v42  ;;  %v967_v33 = vld [vmem:[#allocation10 + $0x5c8] sm:$0xff]  ;;  %v968_v42 = vld [vmem:[#allocation10 + $0x5d0] sm:$0xff] }
 0x302   :  { %v971_v43 = vld [vmem:[#allocation10 + $0x5e8] sm:$0xff] }
 0x303   :  { %1959 = vmatpush1.bf16.msra.mxu0 %v1958_v50  ;;  %v941_v50 = vld [vmem:[#allocation10 + $0x4f8] sm:$0xff] }
 0x304   :  { %1961 = vmatprep.subr.bf16.mxu0 %v1960_v55  ;;  %v1992_v52 = vpack.c.bf16 %v941_v50, %v939_v49  ;;  %v940_v55 = vld [vmem:[#allocation10 + $0x4f0] sm:$0xff]  ;;  %v1228_v50 = vld [vmem:[#allocation11 + $0x18] sm:$0xff] }
 0x305   :  { %v1994_v28 = vpack.c.bf16 %v940_v55, %v938_v54  ;;  %v972_v49 = vld [vmem:[#allocation10 + $0x5f0] sm:$0xff] }
 0x306   :  { %v1227_v55 = vld [vmem:[#allocation11 + $0x10] sm:$0xff] }
 0x307   :  { %1963 = vmatpush1.bf16.msra.mxu0 %v1962_v38  ;;  %v944_v38 = vld [vmem:[#allocation10 + $0x510] sm:$0xff] }
 0x308   :  { %1965 = vmatprep.subr.bf16.mxu0 %v1964_v60  ;;  %v947_v60 = vld [vmem:[#allocation10 + $0x528] sm:$0xff]  ;;  %v1998_v32 = vpack.c.bf16 %v944_v38, %v942_v30  ;;  %v766_v30 = vrot.slane %v2610_v17, 1  ;;  %v2094_v38 = vpack.c.bf16 %v1231_v57, %v1227_v55  ;;  %v1299_v55 = vld [vmem:[#allocation11 + $0x250] sm:$0xff] }
 0x309   :  { %v2000_v62 = vpack.c.bf16 %v949_v61, %v947_v60  ;;  %v1235_v61 = vld [vmem:[#allocation11 + $0x50] sm:$0xff] }
 0x30a   :  { %1128 = vmatmul.mubr.f32.vlgmr.msra.gmra.mrb[4].mxu0 %v2610_v17  ;;  %v1303_v57 = vld [vmem:[#allocation11 + $0x270] sm:$0xff] }
 0x30b   :  { %1133 = vmatprep.mubr.f32.mxu0 %v2618_v36  ;;  %1967 = vmatpush1.bf16.msra.mxu0 %v1966_v63  ;;  %v948_v63 = vld [vmem:[#allocation10 + $0x530] sm:$0xff] }
 0x30c   :  { %1969 = vmatprep.subr.bf16.mxu0 %v1968_v0  ;;  %v951_v0 = vld [vmem:[#allocation10 + $0x548] sm:$0xff]  ;;  %v2002_v2 = vpack.c.bf16 %v948_v63, %v946_v12  ;;  %v1244_v12 = vld [vmem:[#allocation11 + $0x98] sm:$0xff] }
 0x30d   :  { %v2004_v48 = vpack.c.bf16 %v953_v1, %v951_v0  ;;  %v1248_v63 = vld [vmem:[#allocation11 + $0xb8] sm:$0xff]  ;;  %v1243_v1 = vld [vmem:[#allocation11 + $0x90] sm:$0xff] }
 0x30e   :  { %1134 = vmatmul.mubr.f32.gmra.mrb[6].mxu0 %v2616_v34  ;;  %v777_v34 = vsel %vm290_vm3, %v770_v4, 0.0  ;;  %v2100_v0 = vpack.c.bf16 %v1248_v63, %v1244_v12  ;;  %v1251_v4 = vld [vmem:[#allocation11 + $0xd0] sm:$0xff] }
 0x30f   :  { %1971 = vmatpush1.bf16.msra.mxu0 %v1970_v5  ;;  %1570 = vmatprep.mubr.msk.f32.mxu0 %vm2570_vm4, %v771_v15  ;;  %v952_v5 = vld [vmem:[#allocation10 + $0x550] sm:$0xff]  ;;  %v959_v15 = vld [vmem:[#allocation10 + $0x588] sm:$0xff] }
 0x310   :  { %1973 = vmatprep.subr.bf16.mxu0 %v1972_v8  ;;  %v957_v8 = vld [vmem:[#allocation10 + $0x578] sm:$0xff]  ;;  %v2006_v10 = vpack.c.bf16 %v952_v5, %v950_v3  ;;  %v1315_v63 = vld [vmem:[#allocation11 + $0x2d0] sm:$0xff] }
 0x311   :  { %v2008_v11 = vpack.c.bf16 %v957_v8, %v955_v6  ;;  %v1252_v3 = vld [vmem:[#allocation11 + $0xd8] sm:$0xff]  ;;  %v1255_v6 = vld [vmem:[#allocation11 + $0xf0] sm:$0xff] }
 0x312   :  { %v1256_v5 = vld [vmem:[#allocation11 + $0xf8] sm:$0xff] }
 0x313   :  { %1975 = vmatpush1.bf16.msra.mxu0 %v1974_v16  ;;  %v961_v16 = vld [vmem:[#allocation10 + $0x598] sm:$0xff]  ;;  %v2104_v36 = vpack.c.bf16 %v1256_v5, %v1252_v3  ;;  %v1327_v3 = vld [vmem:[#allocation11 + $0x330] sm:$0xff] }
 0x314   :  { %1977 = vmatprep.subr.bf16.mxu0 %v1976_v22  ;;  %v2010_v22 = vpack.c.bf16 %v956_v14, %v954_v13  ;;  %v2012_v18 = vpack.c.bf16 %v961_v16, %v959_v15  ;;  %v1260_v8 = vld [vmem:[#allocation11 + $0x118] sm:$0xff]  ;;  %v1259_v14 = vld [vmem:[#allocation11 + $0x110] sm:$0xff] }
 0x315   :  { %v1263_v15 = vld [vmem:[#allocation11 + $0x130] sm:$0xff]  ;;  %v1268_v16 = vld [vmem:[#allocation11 + $0x158] sm:$0xff] }
 0x316   :  { %v1332_v5 = vld [vmem:[#allocation11 + $0x358] sm:$0xff] }
 0x317   :  { %1979 = vmatpush1.bf16.msra.mxu0 %v1978_v26  ;;  %v965_v26 = vld [vmem:[#allocation10 + $0x5b8] sm:$0xff] }
 0x318   :  { %1981 = vmatprep.subr.bf16.mxu0 %v1980_v27  ;;  %v2014_v27 = vpack.c.bf16 %v960_v24, %v958_v20  ;;  %v2016_v23 = vpack.c.bf16 %v965_v26, %v963_v25  ;;  %v1267_v20 = vld [vmem:[#allocation11 + $0x150] sm:$0xff]  ;;  %v1276_v25 = vld [vmem:[#allocation11 + $0x198] sm:$0xff] }
 0x319   :  { %v1271_v24 = vld [vmem:[#allocation11 + $0x170] sm:$0xff]  ;;  %v1280_v26 = vld [vmem:[#allocation11 + $0x1b8] sm:$0xff] }
 0x31b   :  { %1983 = vmatpush1.bf16.msra.mxu0 %v1982_v35  ;;  %v969_v35 = vld [vmem:[#allocation10 + $0x5d8] sm:$0xff] }
 0x31c   :  { %1985 = vmatprep.subr.bf16.mxu0 %v1984_v37  ;;  %v2018_v37 = vpack.c.bf16 %v964_v31, %v962_v29  ;;  %v2020_v39 = vpack.c.bf16 %v969_v35, %v967_v33  ;;  %v1275_v29 = vld [vmem:[#allocation11 + $0x190] sm:$0xff]  ;;  %v1284_v33 = vld [vmem:[#allocation11 + $0x1d8] sm:$0xff] }
 0x31d   :  { %v1279_v31 = vld [vmem:[#allocation11 + $0x1b0] sm:$0xff]  ;;  %v1288_v35 = vld [vmem:[#allocation11 + $0x1f8] sm:$0xff] }
 0x31f   :  { %1987 = vmatpush1.bf16.msra.mxu0 %v1986_v44  ;;  %v973_v44 = vld [vmem:[#allocation10 + $0x5f8] sm:$0xff] }
 0x320   :  { %1989 = vmatprep.subr.bf16.mxu0 %v1988_v45  ;;  %v2022_v45 = vpack.c.bf16 %v968_v42, %v966_v41  ;;  %v2024_v46 = vpack.c.bf16 %v973_v44, %v971_v43  ;;  %v1283_v41 = vld [vmem:[#allocation11 + $0x1d0] sm:$0xff]  ;;  %v1292_v43 = vld [vmem:[#allocation11 + $0x218] sm:$0xff] }
 0x321   :  { %v1287_v42 = vld [vmem:[#allocation11 + $0x1f0] sm:$0xff]  ;;  %v1296_v44 = vld [vmem:[#allocation11 + $0x238] sm:$0xff] }
 0x323   :  { %1991 = vmatpush1.bf16.msra.mxu0 %v1990_v51  ;;  %v1232_v51 = vld [vmem:[#allocation11 + $0x38] sm:$0xff] }
 0x324   :  { %1993 = vmatprep.subr.bf16.mxu0 %v1992_v52  ;;  %v2026_v52 = vpack.c.bf16 %v972_v49, %v970_v47  ;;  %v2092_v54 = vpack.c.bf16 %v1232_v51, %v1228_v50  ;;  %v1291_v47 = vld [vmem:[#allocation11 + $0x210] sm:$0xff]  ;;  %v1300_v50 = vld [vmem:[#allocation11 + $0x258] sm:$0xff] }
 0x325   :  { %v1295_v49 = vld [vmem:[#allocation11 + $0x230] sm:$0xff]  ;;  %v1304_v51 = vld [vmem:[#allocation11 + $0x278] sm:$0xff] }
 0x327   :  { %1995 = vmatpush1.bf16.msra.mxu0 %v1994_v28  ;;  %v1236_v28 = vld [vmem:[#allocation11 + $0x58] sm:$0xff] }
 0x328   :  { %1997 = vmatprep.subr.bf16.mxu0 %v1996_v59  ;;  %v1240_v59 = vld [vmem:[#allocation11 + $0x78] sm:$0xff] }
 0x329   :  { %v2096_v60 = vpack.c.bf16 %v1240_v59, %v1236_v28  ;;  %v1312_v28 = vld [vmem:[#allocation11 + $0x2b8] sm:$0xff]  ;;  %v2130_v59 = vpack.c.bf16 %v1303_v57, %v1299_v55  ;;  %v2193_v55 = vld [vmem:[#allocation5] sm:$0xff] }
 0x32b   :  { %1999 = vmatpush1.bf16.msra.mxu0 %v1998_v32  ;;  %v1239_v32 = vld [vmem:[#allocation11 + $0x70] sm:$0xff] }
 0x32c   :  { %2001 = vmatprep.subr.bf16.mxu0 %v2000_v62  ;;  %v768_v62 = vsel %vm290_vm3, %v766_v30, %v767_v58  ;;  %v2098_v17 = vpack.c.bf16 %v1239_v32, %v1235_v61  ;;  %v1316_v61 = vld [vmem:[#allocation11 + $0x2d8] sm:$0xff] }
 0x32d   :  { %v1320_v32 = vld [vmem:[#allocation11 + $0x2f8] sm:$0xff] }
 0x32e   :  { %v2136_v12 = vpack.c.bf16 %v1320_v32, %v1316_v61  ;;  %v2194_v32 = vld [vmem:[#allocation5 + $0x8] sm:$0xff] }
 0x32f   :  { %2003 = vmatpush1.bf16.msra.mxu0 %v2002_v2  ;;  %v1247_v2 = vld [vmem:[#allocation11 + $0xb0] sm:$0xff] }
 0x330   :  { %2005 = vmatprep.subr.bf16.mxu0 %v2004_v48  ;;  %v776_v48 = vsel %vm290_vm3, %v767_v58, 0.0  ;;  %v2102_v19 = vpack.c.bf16 %v1247_v2, %v1243_v1  ;;  %v1308_v58 = vld [vmem:[#allocation11 + $0x298] sm:$0xff] }
 0x331   :  { %v2132_v30 = vpack.c.bf16 %v1312_v28, %v1308_v58 }
 0x333   :  { %2007 = vmatpush1.bf16.msra.mxu0 %v2006_v10  ;;  %v1264_v10 = vld [vmem:[#allocation11 + $0x138] sm:$0xff] }
 0x334   :  { %2009 = vmatprep.subr.bf16.mxu0 %v2008_v11  ;;  %v2106_v11 = vpack.c.bf16 %v1255_v6, %v1251_v4  ;;  %v2108_v13 = vpack.c.bf16 %v1264_v10, %v1260_v8  ;;  %v1331_v6 = vld [vmem:[#allocation11 + $0x350] sm:$0xff] }
 0x335   :  { %v1335_v8 = vld [vmem:[#allocation11 + $0x370] sm:$0xff] }
 0x336   :  { %v2146_v10 = vpack.c.bf16 %v1335_v8, %v1331_v6 }
 0x337   :  { %2011 = vmatpush1.bf16.msra.mxu0 %v2010_v22  ;;  %v1272_v22 = vld [vmem:[#allocation11 + $0x178] sm:$0xff] }
 0x338   :  { %2013 = vmatprep.subr.bf16.mxu0 %v2012_v18  ;;  %v2110_v18 = vpack.c.bf16 %v1263_v15, %v1259_v14  ;;  %v2112_v56 = vpack.c.bf16 %v1272_v22, %v1268_v16  ;;  %v1340_v14 = vld [vmem:[#allocation11 + $0x398] sm:$0xff]  ;;  %v1337_v22 = vld [vmem:[#allocation11 + $0x380] sm:$0xff] }
 0x339   :  { %v1344_v16 = vld [vmem:[#allocation11 + $0x3b8] sm:$0xff] }
 0x33b   :  { %2015 = vmatpush1.bf16.msra.mxu0 %v2014_v27  ;;  %v2114_v27 = vpack.c.bf16 %v1271_v24, %v1267_v20  ;;  %v1339_v24 = vld [vmem:[#allocation11 + $0x390] sm:$0xff] }
 0x33c   :  { %2017 = vmatprep.subr.bf16.mxu0 %v2016_v23  ;;  %v2116_v23 = vpack.c.bf16 %v1280_v26, %v1276_v25  ;;  %v1343_v25 = vld [vmem:[#allocation11 + $0x3b0] sm:$0xff] }
 0x33d   :  { %v2150_v26 = vpack.c.bf16 %v1343_v25, %v1339_v24 }
 0x33f   :  { %2019 = vmatpush1.bf16.msra.mxu0 %v2018_v37  ;;  %v2118_v37 = vpack.c.bf16 %v1279_v31, %v1275_v29  ;;  %v1348_v29 = vld [vmem:[#allocation11 + $0x3d8] sm:$0xff] }
 0x340   :  { %2021 = vmatprep.subr.bf16.mxu0 %v2020_v39  ;;  %v2120_v39 = vpack.c.bf16 %v1288_v35, %v1284_v33  ;;  %v1352_v33 = vld [vmem:[#allocation11 + $0x3f8] sm:$0xff]  ;;  %v1345_v35 = vld [vmem:[#allocation11 + $0x3c0] sm:$0xff] }
 0x343   :  { %2023 = vmatpush1.bf16.msra.mxu0 %v2022_v45  ;;  %v2122_v45 = vpack.c.bf16 %v1287_v42, %v1283_v41  ;;  %v1347_v42 = vld [vmem:[#allocation11 + $0x3d0] sm:$0xff] }
 0x344   :  { %2025 = vmatprep.subr.bf16.mxu0 %v2024_v46  ;;  %v2124_v46 = vpack.c.bf16 %v1296_v44, %v1292_v43  ;;  %v1351_v43 = vld [vmem:[#allocation11 + $0x3f0] sm:$0xff] }
 0x345   :  { %v2154_v44 = vpack.c.bf16 %v1351_v43, %v1347_v42 }
 0x347   :  { %2027 = vmatpush1.bf16.msra.mxu0 %v2026_v52  ;;  %v2126_v52 = vpack.c.bf16 %v1295_v49, %v1291_v47 }
 0x348   :  { %2093 = vmatprep.subr.bf16.mxu0 %v2092_v54  ;;  %v2128_v54 = vpack.c.bf16 %v1304_v51, %v1300_v50 }
 0x34a   :  { %1571 = vmatmul.mubr.msk.f32.vlgmr.msra.gmra.mrb[4].mxu0 %vm2570_vm4, %v768_v62 }
 0x34b   :  { %1572 = vmatprep.mubr.msk.f32.mxu0 %vm2584_vm5, %v777_v34  ;;  %2095 = vmatpush1.bf16.msra.mxu0 %v2094_v38  ;;  %v1307_v38 = vld [vmem:[#allocation11 + $0x290] sm:$0xff] }
 0x34c   :  { %2097 = vmatprep.subr.bf16.mxu0 %v2096_v60  ;;  %v1311_v60 = vld [vmem:[#allocation11 + $0x2b0] sm:$0xff] }
 0x34d   :  { %v2134_v62 = vpack.c.bf16 %v1311_v60, %v1307_v38  ;;  %v1319_v34 = vld [vmem:[#allocation11 + $0x2f0] sm:$0xff] }
 0x34e   :  { %1573 = vmatmul.mubr.msk.f32.gmra.mrb[6].mxu0 %vm2584_vm5, %v776_v48  ;;  %v2138_v1 = vpack.c.bf16 %v1319_v34, %v1315_v63  ;;  %v1323_v48 = vld [vmem:[#allocation11 + $0x310] sm:$0xff] }
 0x34f   :  { %2099 = vmatpush1.bf16.msra.mxu0 %v2098_v17  ;;  %v1324_v17 = vld [vmem:[#allocation11 + $0x318] sm:$0xff]  ;;  %v1353_v34 = vld [vmem:[%s2696_s9] sm:$0xf]  ;;  %s1542_s9 = sshll.u32 %s2371_s4, 4  ;;  %s1543_s9 = int_to_ptr.vmem [resolvable:$true] %s1542_s9 }
 0x350   :  { %2101 = vmatprep.subr.bf16.mxu0 %v2100_v0  ;;  %v1328_v0 = vld [vmem:[#allocation11 + $0x338] sm:$0xff]  ;;  %s2327_s28 = scalar_lea.vmem %s1543_s9, 1024  ;;  %p2332_p7 = scmp.lt.s32.totalorder %s1543_s9, %s1543_s9 }
 0x351   :  { %v2140_v2 = vpack.c.bf16 %v1328_v0, %v1324_v17  ;;  %v1358_v17 = vrot.slane %v1353_v34, %v2600_v7  ;;  %p2328_p6 = scmp.ne.s32.totalorder %s1543_s9, %s2327_s28  ;;  %p2333_p8 = scmp.lt.s32.totalorder %s2327_s28, %s2327_s28 }
 0x353   :  { %2103 = vmatpush1.bf16.msra.mxu0 %v2102_v19  ;;  %v1336_v19 = vld [vmem:[#allocation11 + $0x378] sm:$0xff]  ;;  %p2334_p9 = por %p2333_p8, %p2332_p7 }
 0x354   :  { %2105 = vmatprep.subr.bf16.mxu0 %v2104_v36  ;;  %v2142_v36 = vpack.c.bf16 %v1327_v3, %v1323_v48  ;;  %v2144_v4 = vpack.c.bf16 %v1336_v19, %v1332_v5 }
 0x355   :  { %p2335_p10 = pnand %p2334_p9, %p2328_p6 }
 0x357   :  { %2107 = vmatpush1.bf16.msra.mxu0 %v2106_v11  ;;  %v1338_v11 = vld [vmem:[#allocation11 + $0x388] sm:$0xff] }
 0x358   :  { %2109 = vmatprep.subr.bf16.mxu0 %v2108_v13  ;;  %v1342_v13 = vld [vmem:[#allocation11 + $0x3a8] sm:$0xff] }
 0x359   :  { %v2084_v15 = vpack.c.bf16 %v1342_v13, %v1338_v11 }
 0x35b   :  { %2111 = vmatpush1.bf16.msra.mxu0 %v2110_v18  ;;  %v1341_v18 = vld [vmem:[#allocation11 + $0x3a0] sm:$0xff]  ;;  %2085 = vmatprep.subr.bf16.mxu1 %v2084_v15 }
 0x35c   :  { %2113 = vmatprep.subr.bf16.mxu0 %v2112_v56  ;;  %v2148_v56 = vpack.c.bf16 %v1344_v16, %v1340_v14  ;;  %v2086_v20 = vpack.c.bf16 %v1341_v18, %v1337_v22 }
 0x35e   :  { %2087 = vmatpush1.bf16.msra.mxu1 %v2086_v20 }
 0x35f   :  { %2115 = vmatpush1.bf16.msra.mxu0 %v2114_v27  ;;  %v1346_v27 = vld [vmem:[#allocation11 + $0x3c8] sm:$0xff] }
 0x360   :  { %2117 = vmatprep.subr.bf16.mxu0 %v2116_v23  ;;  %v1350_v23 = vld [vmem:[#allocation11 + $0x3e8] sm:$0xff] }
 0x361   :  { %v2088_v31 = vpack.c.bf16 %v1350_v23, %v1346_v27 }
 0x363   :  { %2119 = vmatpush1.bf16.msra.mxu0 %v2118_v37  ;;  %v1349_v37 = vld [vmem:[#allocation11 + $0x3e0] sm:$0xff]  ;;  %2089 = vmatprep.subr.bf16.mxu1 %v2088_v31 }
 0x364   :  { %2121 = vmatprep.subr.bf16.mxu0 %v2120_v39  ;;  %v2152_v39 = vpack.c.bf16 %v1352_v33, %v1348_v29  ;;  %v2090_v41 = vpack.c.bf16 %v1349_v37, %v1345_v35 }
 0x366   :  { %2091 = vmatpush1.bf16.msra.mxu1 %v2090_v41 }
 0x367   :  { %2123 = vmatpush1.bf16.msra.mxu0 %v2122_v45  ;;  %v974_v45 = vld [vmem:[%s2694_s7] sm:$0x3] }
 0x368   :  { %2125 = vmatprep.subr.bf16.mxu0 %v2124_v46  ;;  %v979_v46 = vrot.slane %v974_v45, %v2600_v7  ;;  %v983_v47 = vrot.slane %v974_v45, %v2606_v9 }
 0x36b   :  { %2127 = vmatpush1.bf16.msra.mxu0 %v2126_v52 }
 0x36c   :  { %2129 = vmatprep.subr.bf16.mxu0 %v2128_v54 }
 0x36f   :  { %2131 = vmatpush1.bf16.msra.mxu0 %v2130_v59 }
 0x370   :  { %2133 = vmatprep.subr.bf16.mxu0 %v2132_v30 }
 0x373   :  { %2135 = vmatpush1.bf16.msra.mxu0 %v2134_v62 }
 0x374   :  { %2137 = vmatprep.subr.bf16.mxu0 %v2136_v12 }
 0x377   :  { %2139 = vmatpush1.bf16.msra.mxu0 %v2138_v1  ;;  %v1362_v1 = vrot.slane %v1353_v34, %v2606_v9 }
 0x378   :  { %2141 = vmatprep.subr.bf16.mxu0 %v2140_v2 }
 0x37b   :  { %2143 = vmatpush1.bf16.msra.mxu0 %v2142_v36 }
 0x37c   :  { %2145 = vmatprep.subr.bf16.mxu0 %v2144_v4 }
 0x37f   :  { %2147 = vmatpush1.bf16.msra.mxu0 %v2146_v10 }
 0x380   :  { %2149 = vmatprep.subr.bf16.mxu0 %v2148_v56 }
 0x383   :  { %2151 = vmatpush1.bf16.msra.mxu0 %v2150_v26 }
 0x384   :  { %2153 = vmatprep.subr.bf16.mxu0 %v2152_v39 }
 0x387   :  { %2155 = vmatpush1.bf16.msra.mxu0 %v2154_v44 }
 0x41d   :  { %v1206_v49 = vpop.f32.mrb[4].mxu0 }
 0x41e   :  { %v2160_v50 = vadd.f32 %v1206_v49, %v979_v46  ;;  %v1208_v51 = vpop.f32.mrb[5].mxu0 }
 0x41f   :  { %v2161_v52 = vadd.f32 %v1208_v51, %v983_v47 }
 0x420   :  { %v1217_v54 = vadd.f32 %v2160_v50, %v2542_v40  ;;  %v1365_v40 = vsub.s32 2, %v2517_v21 }
 0x421   :  { %v1218_v57 = vadd.f32 %v2193_v55, %v2161_v52  ;;  %v1212_v58 = vpop.f32.mrb[6].mxu0 }
 0x422   :  { %v2162_v28 = vadd.f32 %v1212_v58, %v979_v46  ;;  %v1214_v59 = vpop.f32.mrb[7].mxu0  ;;  %v1221_v60 = vmax.f32 %v1217_v54, 0.0  ;;  %v1366_v0 = vrot.slane %v1353_v34, %v1365_v40 }
 0x423   :  { %v1222_v30 = vmax.f32 %v1218_v57, 0.0  ;;  %v2163_v38 = vadd.f32 %v1214_v59, %v983_v47 }
 0x424   :  { %v1219_v61 = vadd.f32 %v2162_v28, %v2552_v53  ;;  %v1369_v53 = vsub.s32 3, %v2517_v21 }
 0x425   :  { %v1220_v62 = vadd.f32 %v2194_v32, %v2163_v38  ;;  %1439 = vmatprep.mubr.f32.mxu1 %v1222_v30  ;;  %1516 = vmatprep.mubr.f32.mxu0 %v1222_v30 }
 0x426   :  { %1440 = vmatmul.mubr.f32.vlgmr.msra.gmra.mrb[4].mxu1 %v1221_v60  ;;  %1517 = vmatmul.mubr.f32.vlgmr.msra.gmra.mrb[8].mxu0 %v1221_v60  ;;  %v1223_v63 = vmax.f32 %v1219_v61, 0.0  ;;  %v1370_v2 = vrot.slane %v1353_v34, %v1369_v53 }
 0x427   :  { %v1224_v12 = vmax.f32 %v1220_v62, 0.0 }
 0x429   :  { %1445 = vmatprep.mubr.f32.mxu1 %v1224_v12  ;;  %1522 = vmatprep.mubr.f32.mxu0 %v1224_v12 }
 0x42a   :  { %1446 = vmatmul.mubr.f32.gmra.mrb[6].mxu1 %v1223_v63  ;;  %1523 = vmatmul.mubr.f32.gmra.mrb[10].mxu0 %v1223_v63 }
 0x4f9   :  { %v1441_v48 = vpop.f32.mrb[4].mxu1  ;;  %v1518_v3 = vpop.f32.mrb[8].mxu0 }
 0x4fa   :  { %v1442_v5 = vadd.f32 %v1441_v48, %v1358_v17  ;;  %v1519_v19 = vadd.f32 %v1518_v3, %v1366_v0  ;;  %v1443_v36 = vpop.f32.mrb[5].mxu1  ;;  %v1520_v4 = vpop.f32.mrb[9].mxu0 }
 0x4fb   :  { %v1444_v6 = vadd.f32 %v1443_v36, %v1362_v1  ;;  %v1521_v8 = vadd.f32 %v1520_v4, %v1370_v2 }
 0x4fc   :  { %1529 = vst [vmem:[#allocation13] sm:$0xff] %v1442_v5  ;;  %1531 = vst [vmem:[#allocation13 + $0x10] sm:$0xff] %v1519_v19 }
 0x4fd   :  { %1530 = vst [vmem:[#allocation13 + $0x8] sm:$0xff] %v1444_v6  ;;  %1532 = vst [vmem:[#allocation13 + $0x18] sm:$0xff] %v1521_v8  ;;  %v1447_v21 = vpop.f32.mrb[6].mxu1  ;;  %v1524_v7 = vpop.f32.mrb[10].mxu0 }
 0x4fe   :  { %v1448_v10 = vadd.f32 %v1447_v21, %v1358_v17  ;;  %v1525_v11 = vadd.f32 %v1524_v7, %v1366_v0  ;;  %v1449_v9 = vpop.f32.mrb[7].mxu1  ;;  %v1526_v13 = vpop.f32.mrb[11].mxu0 }
 0x4ff   :  { %v1450_v14 = vadd.f32 %v1449_v9, %v1362_v1  ;;  %v1527_v15 = vadd.f32 %v1526_v13, %v1370_v2 }
 0x500   :  { %1533 = vst [vmem:[#allocation13 + $0x20] sm:$0xff] %v1448_v10  ;;  %1535 = vst [vmem:[#allocation13 + $0x30] sm:$0xff] %v1525_v11 }
 0x501   :  { %1534 = vst [vmem:[#allocation13 + $0x28] sm:$0xff] %v1450_v14  ;;  %1536 = vst [vmem:[#allocation13 + $0x38] sm:$0xff] %v1527_v15 }
 0x502   :  { %2338 = shalt.err (!%p2335_p10)
}
 0x503   :  { %s2339_s1 = scalar_lea.hbm %s2697_s10, 1024 }
 0x504   :  { %p2340_p11 = scmp.ne.s32.totalorder %s2697_s10, %s2339_s1  ;;  %p2343_p12 = scmp.lt.u32.totalorder %s2339_s1, %s2697_s10 }
 0x506   :  { %p2345_p13 = pnand %p2343_p12, %p2340_p11 }
 0x508   :  { %2348 = shalt.err (!%p2345_p13)
}
 0x509   :  { %1548 = dma.vmem_to_hbm [thread:$0]  %s1543_s9, 1024, %s2697_s10, [#allocation4], %s2369_s6, %s2369_s6, %s2370_s14  }
 0x50a   :  { %2357 = dma.done.wait [#allocation4], 1024  }
 0x50b   :  { %2358 = vsyncadd [#allocation4], 4294966272 }
 0x50c   :  { %1552 = vsyncpa [#allocation3], 1 }
 0x50d   :  { %1553 = vsyncpa [#allocation6], 1 }
 0x50e   :  { %1554 = vsyncpa [#allocation9], 1 }
 0x50f   :  { %1555 = vsyncpa [#allocation12], 1 }
 0x510   :  { %1556 = vsyncpa [#allocation4], 1 }

</bundles_post_ra>
